<compile_context>
chip_gen: v7x
topology: tpu7x:2x2x1
jax: 0.10.0
libtpu: 0.0.40
codegen_flags: <defaults>
</compile_context>

<pallas_src>
import functools

import jax
import jax.numpy as jnp
from jax.experimental import pallas as pl
from jax.experimental.pallas import tpu as pltpu


def _round_up(v, m):
    return (v + m - 1) // m * m


def _pick_time_block(seq, bb, i_pad, h_pad, n_layer, n_act,
                     budget_bytes=40 * 1024 * 1024):
    """Largest time block whose pipeline working set fits a v7x-safe (64 MiB) VMEM budget."""
    n_wr = max(n_layer - 1, 1)
    fixed = 4 * (2 * i_pad * h_pad                 # layer-0 weight (default 2-deep buffers)
                 + 2 * n_wr * h_pad * h_pad        # stacked layer>=1 weights
                 + 2 * 4 * n_layer * h_pad         # b / u / gamma / beta
                 + n_layer * bb * h_pad            # carried hidden scratch
                 + 2 * n_layer * bb * h_pad)       # h_n output block
    per_ts = 4 * bb * (2 * i_pad                   # x block (double-buffered)
                       + 2 * h_pad                 # out block (double-buffered)
                       + n_act * h_pad)            # ping-pong activation scratch
    ts = max(8, (budget_bytes - fixed) // per_ts)
    ts = int(min(ts, 256, _round_up(seq, 8)))
    return max(8, (ts // 8) * 8)


def _fused_indrnn_kernel(x_ref, w0_ref, wr_ref, b_ref, u_ref, g_ref, bt_ref,
                         out_ref, hn_ref, hx_ref, *act_refs,
                         ts, n_layer, inv_h, last_blk, last_t, unroll):
    """One grid step == TS timesteps of ALL layers for one batch block.

    x_ref:   (TS, BB, I_P)         time-block of padded inputs
    w0_ref:  (I_P, H_P)            layer-0 Conv1d(k=1) weight (transposed, zero-padded)
    wr_ref:  (max(L-1,1), H_P, H_P) layers 1..L-1 weights (zero-padded)
    b/u/g/bt_ref: (L, 1, H_P)      bias / recurrent weight / LN gamma / LN beta (padded=0)
    out_ref: (TS, BB, H_P)         last layer's h_t for the block
    hn_ref:  (L, BB, H_P)          per-layer hidden state at the last REAL timestep
    hx_ref:  (L, BB, H_P)          carried hidden state across time blocks (scratch)
    act_refs: 0..2 x (TS, BB, H_P) ping-pong inter-layer activation blocks (scratch)
    """
    si = pl.program_id(1)

    @pl.when(si == 0)
    def _():
        hx_ref[...] = jnp.zeros_like(hx_ref)   # module's h0 buffer is zeros

    TS, BB, IP = x_ref.shape
    HP = w0_ref.shape[1]
    eps = jnp.float32(1e-6)                    # nn.LayerNorm(..., eps=1e-06) in the module

    for l in range(n_layer):
        if l == 0:
            src, k_dim, w = x_ref, IP, w0_ref[...]
        else:
            src, k_dim, w = act_refs[(l - 1) % len(act_refs)], HP, wr_ref[l - 1]
        dst = out_ref if l == n_layer - 1 else act_refs[l % len(act_refs)]

        # Hoisted Conv1d(kernel=1): one MXU matmul over the whole time block, stored
        # directly into the destination block (no separate lin scratch; each row is read
        # back once in the loop below and overwritten with h_t).
        lin = jnp.dot(src[...].reshape(TS * BB, k_dim), w,
                      preferred_element_type=jnp.float32)
        dst[...] = (lin.reshape(TS, BB, HP) + b_ref[l]).astype(dst.dtype)

        # Per-feature vectors materialized as (BB, HP) vregs once per layer/block.
        u = jnp.broadcast_to(u_ref[l], (BB, HP))
        g = jnp.broadcast_to(g_ref[l], (BB, HP))
        beta = jnp.broadcast_to(bt_ref[l], (BB, HP))

        def step(t, hx, dst=dst, u=u, g=g, beta=beta):
            pre = dst[t] + u * hx
            # One-pass LayerNorm statistics: two INDEPENDENT cross-lane reductions.
            s1 = jnp.sum(pre, axis=-1, keepdims=True)
            s2 = jnp.sum(pre * pre, axis=-1, keepdims=True)
            mean = s1 * inv_h
            var = jnp.maximum(s2 * inv_h - mean * mean, 0.0)
            y = (pre - mean) * jax.lax.rsqrt(var + eps) * g + beta
            h_new = jnp.clip(y, 0.0, 6.0)      # nonlinearity='relu' -> F.relu6
            dst[t] = h_new.astype(dst.dtype)
            return h_new

        hx_ref[l] = jax.lax.fori_loop(0, ts, step, hx_ref[l], unroll=unroll)

        @pl.when(si == last_blk)
        def _(dst=dst, l=l):
            hn_ref[l] = dst[last_t]            # hidden state at the last REAL timestep


def layer_norm_indrnn_forward(x, params):
    """Full multi-layer forward.

    x: (seq, batch, x_size)  (batch_first=False convention of the PyTorch module)
    params: list of (w, b, u, gamma, beta) per layer; w is (in_size, hidden).
    Returns (output, h_n) matching the PyTorch module:
      output: (seq, batch, hidden)   (squeezed at dim 2 iff hidden == 1)
      h_n:    (n_layer, batch, hidden)
    """
    seq, batch, x_size = x.shape
    n_layer = len(params)
    hidden = params[0][0].shape[1]

    b_pad = _round_up(batch, 8)
    h_pad = _round_up(hidden, 128)
    i_pad = _round_up(x_size, 128)

    # Batch blocks: 2 blocks when the padded batch allows (feeds v7x's 2nd TensorCore via
    # the leading "parallel" grid axis); otherwise one block.
    bb = b_pad // 2 if (b_pad % 16 == 0) else b_pad
    n_act = min(2, max(n_layer - 1, 0))        # ping-pong inter-layer activation buffers
    ts = _pick_time_block(seq, bb, i_pad, h_pad, n_layer, n_act)
    seq_pad = _round_up(seq, ts)

    # Pad once up front; padded lanes/rows are zero and stay zero through the recurrence
    # (zero weight columns / bias / u / gamma / beta), so no masking is needed anywhere.
    x_p = jnp.zeros((seq_pad, b_pad, i_pad), jnp.float32)
    x_p = x_p.at[:seq, :batch, :x_size].set(x.astype(jnp.float32))

    w0_p = jnp.zeros((i_pad, h_pad), jnp.float32).at[:x_size, :hidden].set(params[0][0])
    n_wr = max(n_layer - 1, 1)
    wr_p = jnp.zeros((n_wr, h_pad, h_pad), jnp.float32)
    for l in range(1, n_layer):
        wr_p = wr_p.at[l - 1, :hidden, :hidden].set(params[l][0])

    def stack_vec(idx):
        v = jnp.zeros((n_layer, 1, h_pad), jnp.float32)
        for l in range(n_layer):
            v = v.at[l, 0, :hidden].set(params[l][idx])
        return v

    b_all = stack_vec(1)
    u_all = stack_vec(2)
    g_all = stack_vec(3)
    bt_all = stack_vec(4)

    kernel = functools.partial(
        _fused_indrnn_kernel,
        ts=ts, n_layer=n_layer, inv_h=1.0 / hidden,
        last_blk=(seq - 1) // ts, last_t=(seq - 1) % ts,
        unroll=min(ts, 8))

    # Grid-invariant operands (weights / per-layer vectors) are small relative to the time
    # blocks; their default 2-deep buffering is accounted for in the TS VMEM budget above.
    const_w0 = pl.BlockSpec((i_pad, h_pad), lambda bi, si: (0, 0))
    const_wr = pl.BlockSpec((n_wr, h_pad, h_pad), lambda bi, si: (0, 0, 0))
    const_vec = pl.BlockSpec((n_layer, 1, h_pad), lambda bi, si: (0, 0, 0))

    grid_spec = pltpu.PrefetchScalarGridSpec(
        num_scalar_prefetch=0,
        grid=(b_pad // bb, seq_pad // ts),
        in_specs=[
            pl.BlockSpec((ts, bb, i_pad), lambda bi, si: (si, bi, 0)),
            const_w0, const_wr,
            const_vec, const_vec, const_vec, const_vec,
        ],
        out_specs=[
            pl.BlockSpec((ts, bb, h_pad), lambda bi, si: (si, bi, 0)),
            pl.BlockSpec((n_layer, bb, h_pad), lambda bi, si: (0, bi, 0)),
        ],
        scratch_shapes=[pltpu.VMEM((n_layer, bb, h_pad), jnp.float32)]
                       + [pltpu.VMEM((ts, bb, h_pad), jnp.float32)] * n_act,
    )

    out_p, hn_p = pl.pallas_call(
        kernel,
        out_shape=(jax.ShapeDtypeStruct((seq_pad, b_pad, h_pad), jnp.float32),
                   jax.ShapeDtypeStruct((n_layer, b_pad, h_pad), jnp.float32)),
        grid_spec=grid_spec,
        compiler_params=pltpu.CompilerParams(
            # batch blocks are independent ("parallel"); time recurrence is sequential.
            dimension_semantics=("parallel", "arbitrary"),
            vmem_limit_bytes=56 * 1024 * 1024),
    )(x_p, w0_p, wr_p, b_all, u_all, g_all, bt_all)

    out = out_p[:seq, :batch, :hidden]
    hn_straight = hn_p[:, :batch, :hidden]     # (n_layer, batch, hidden)
    # PyTorch: torch.cat(hiddens, -1).view(n_layer, batch, hidden)
    hid = jnp.concatenate([hn_straight[l] for l in range(n_layer)], axis=-1)
    hid = hid.reshape(n_layer, batch, hidden)
    if hidden == 1:   # x.squeeze(2) only squeezes when that dim is 1
        out = out.reshape(seq, batch)
    return out, hid


def _ref_forward(x, params):
    """Pure-JAX reference of the same math for a sanity check."""
    cur = x
    hiddens = []
    for (w, b, u, gamma, beta) in params:
        seq, batch, _ = cur.shape
        lin = jnp.einsum('sbi,ih->sbh', cur, w) + b
        hx = jnp.zeros((batch, w.shape[1]), jnp.float32)
        outs = []
        for t in range(seq):
            pre = lin[t] + u * hx
            mean = jnp.mean(pre, axis=-1, keepdims=True)
            var = jnp.mean((pre - mean) ** 2, axis=-1, keepdims=True)
            y = (pre - mean) / jnp.sqrt(var + 1e-6) * gamma + beta
            hx = jnp.clip(y, 0.0, 6.0)
            outs.append(hx)
        cur = jnp.stack(outs, 0)
        hiddens.append(hx)
    hid = jnp.concatenate(hiddens, -1).reshape(len(params), x.shape[1], -1)
    return cur, hid


if __name__ == "__main__":
    key = jax.random.PRNGKey(0)
    seq, batch, x_size, hidden, n_layer = 8, 2, 16, 32, 2

    keys = jax.random.split(key, 1 + 2 * n_layer)
    kx, pk = keys[0], keys[1:]

    x = jax.random.normal(kx, (seq, batch, x_size), jnp.float32)

    params = []
    for i in range(n_layer):
        in_size = x_size if i == 0 else hidden
        kw, ku = pk[2 * i], pk[2 * i + 1]
        # Conv1d weight ~ Normal(0, 0.01); stored transposed as (in_size, hidden).
        w = 0.01 * jax.random.normal(kw, (in_size, hidden), jnp.float32)
        b = jnp.zeros((hidden,), jnp.float32)               # Conv1d bias init to 0
        u = jax.random.uniform(ku, (hidden,), jnp.float32)  # recurrent ~ U[0,1)
        gamma = jnp.ones((hidden,), jnp.float32)            # LayerNorm weight
        beta = jnp.zeros((hidden,), jnp.float32)            # LayerNorm bias
        params.append((w, b, u, gamma, beta))

    out, hn = layer_norm_indrnn_forward(x, params)
    jax.block_until_ready((out, hn))

    out_ref, hn_ref = _ref_forward(x, params)
    assert jnp.allclose(out, out_ref, atol=1e-5, rtol=1e-5)
    assert jnp.allclose(hn, hn_ref, atol=1e-5, rtol=1e-5)

    print("KERNEL_OK")
</pallas_src>

<mosaic_0001>
module attributes {stable_mosaic.version = 11 : i64} {
  func.func @_fused_indrnn_kernel(%arg0: i32, %arg1: i32, %arg2: memref<8x8x128xf32, #tpu.memory_space<vmem>>, %arg3: memref<128x128xf32, #tpu.memory_space<vmem>>, %arg4: memref<1x128x128xf32, #tpu.memory_space<vmem>>, %arg5: memref<2x1x128xf32, #tpu.memory_space<vmem>>, %arg6: memref<2x1x128xf32, #tpu.memory_space<vmem>>, %arg7: memref<2x1x128xf32, #tpu.memory_space<vmem>>, %arg8: memref<2x1x128xf32, #tpu.memory_space<vmem>>, %arg9: memref<8x8x128xf32, #tpu.memory_space<vmem>>, %arg10: memref<2x8x128xf32, #tpu.memory_space<vmem>>, %arg11: memref<2x8x128xf32, #tpu.memory_space<vmem>>, %arg12: memref<8x8x128xf32, #tpu.memory_space<vmem>>) attributes {dimension_semantics = [#tpu.dimension_semantics<parallel>, #tpu.dimension_semantics<arbitrary>], iteration_bounds = array<i64: 1, 1>, scalar_prefetch = 0 : i64, scratch_operands = 2 : i64, tpu.core_type = #tpu.core_type<tc>, window_params = [{transform_indices = @transform_0, window_bounds = array<i64: 8, 8, 128>}, {pipeline_mode = #tpu.pipeline_mode<synchronous>, transform_indices = @transform_1, window_bounds = array<i64: 128, 128>}, {pipeline_mode = #tpu.pipeline_mode<synchronous>, transform_indices = @transform_2, window_bounds = array<i64: 1, 128, 128>}, {pipeline_mode = #tpu.pipeline_mode<synchronous>, transform_indices = @transform_3, window_bounds = array<i64: 2, 1, 128>}, {pipeline_mode = #tpu.pipeline_mode<synchronous>, transform_indices = @transform_4, window_bounds = array<i64: 2, 1, 128>}, {pipeline_mode = #tpu.pipeline_mode<synchronous>, transform_indices = @transform_5, window_bounds = array<i64: 2, 1, 128>}, {pipeline_mode = #tpu.pipeline_mode<synchronous>, transform_indices = @transform_6, window_bounds = array<i64: 2, 1, 128>}, {transform_indices = @transform_7, window_bounds = array<i64: 8, 8, 128>}, {transform_indices = @transform_8, window_bounds = array<i64: 2, 8, 128>}]} {
    %c0_i32 = arith.constant 0 : i32
    %0 = arith.cmpi eq, %arg1, %c0_i32 : i32
    %1 = arith.extui %0 : i1 to i32
    %c0_i32_0 = arith.constant 0 : i32
    %2 = arith.cmpi ne, %1, %c0_i32_0 : i32
    scf.if %2 {
      %cst_245 = arith.constant 0.000000e+00 : f32
      %626 = vector.broadcast %cst_245 : f32 to vector<2x8x128xf32>
      %c0_246 = arith.constant 0 : index
      %c0_247 = arith.constant 0 : index
      %c0_248 = arith.constant 0 : index
      %627 = vector.load %arg11[%c0_246, %c0_247, %c0_248] : memref<2x8x128xf32, #tpu.memory_space<vmem>>, vector<2x8x128xf32>
      tpu.vector_store %arg11[%c0_246, %c0_247, %c0_248], %626 {strides = array<i32>} : memref<2x8x128xf32, #tpu.memory_space<vmem>>, vector<2x8x128xf32>,
    } else {
    }
    %c0 = arith.constant 0 : index
    %c0_1 = arith.constant 0 : index
    %3 = vector.load %arg3[%c0, %c0_1] : memref<128x128xf32, #tpu.memory_space<vmem>>, vector<128x128xf32>
    %c0_2 = arith.constant 0 : index
    %c0_3 = arith.constant 0 : index
    %c0_4 = arith.constant 0 : index
    %4 = vector.load %arg2[%c0_2, %c0_3, %c0_4] : memref<8x8x128xf32, #tpu.memory_space<vmem>>, vector<8x8x128xf32>
    %5 = vector.shape_cast %4 : vector<8x8x128xf32> to vector<64x128xf32>
    %cst = arith.constant dense<0.000000e+00> : vector<64x128xf32>
    %6 = tpu.matmul %5, %3, %cst {dimension_numbers = #tpu.dot_dimension_numbers<[1], [0], [0], [1], [0, 0, 1, 1], [], []>} : vector<64x128xf32>, vector<128x128xf32>, vector<64x128xf32> -> vector<64x128xf32>
    %7 = vector.shape_cast %6 : vector<64x128xf32> to vector<8x8x128xf32>
    %c0_5 = arith.constant 0 : index
    %c0_6 = arith.constant 0 : index
    %c0_7 = arith.constant 0 : index
    %8 = vector.load %arg5[%c0_5, %c0_6, %c0_7] : memref<2x1x128xf32, #tpu.memory_space<vmem>>, vector<1x1x128xf32>
    %9 = vector.shape_cast %8 : vector<1x1x128xf32> to vector<1x128xf32>
    %10 = vector.shape_cast %9 : vector<1x128xf32> to vector<1x1x128xf32>
    %11 = vector.broadcast %10 : vector<1x1x128xf32> to vector<8x8x128xf32>
    %12 = arith.addf %7, %11 : vector<8x8x128xf32>
    %c0_8 = arith.constant 0 : index
    %c0_9 = arith.constant 0 : index
    %c0_10 = arith.constant 0 : index
    %13 = vector.load %arg12[%c0_8, %c0_9, %c0_10] : memref<8x8x128xf32, #tpu.memory_space<vmem>>, vector<8x8x128xf32>
    tpu.vector_store %arg12[%c0_8, %c0_9, %c0_10], %12 {strides = array<i32>} : memref<8x8x128xf32, #tpu.memory_space<vmem>>, vector<8x8x128xf32>,
    %c0_11 = arith.constant 0 : index
    %c0_12 = arith.constant 0 : index
    %c0_13 = arith.constant 0 : index
    %14 = vector.load %arg6[%c0_11, %c0_12, %c0_13] : memref<2x1x128xf32, #tpu.memory_space<vmem>>, vector<1x1x128xf32>
    %15 = vector.shape_cast %14 : vector<1x1x128xf32> to vector<1x128xf32>
    %16 = vector.shape_cast %15 : vector<1x128xf32> to vector<1x128xf32>
    %17 = vector.broadcast %16 : vector<1x128xf32> to vector<8x128xf32>
    %c0_14 = arith.constant 0 : index
    %c0_15 = arith.constant 0 : index
    %c0_16 = arith.constant 0 : index
    %18 = vector.load %arg7[%c0_14, %c0_15, %c0_16] : memref<2x1x128xf32, #tpu.memory_space<vmem>>, vector<1x1x128xf32>
    %19 = vector.shape_cast %18 : vector<1x1x128xf32> to vector<1x128xf32>
    %20 = vector.shape_cast %19 : vector<1x128xf32> to vector<1x128xf32>
    %21 = vector.broadcast %20 : vector<1x128xf32> to vector<8x128xf32>
    %c0_17 = arith.constant 0 : index
    %c0_18 = arith.constant 0 : index
    %c0_19 = arith.constant 0 : index
    %22 = vector.load %arg8[%c0_17, %c0_18, %c0_19] : memref<2x1x128xf32, #tpu.memory_space<vmem>>, vector<1x1x128xf32>
    %23 = vector.shape_cast %22 : vector<1x1x128xf32> to vector<1x128xf32>
    %24 = vector.shape_cast %23 : vector<1x128xf32> to vector<1x128xf32>
    %25 = vector.broadcast %24 : vector<1x128xf32> to vector<8x128xf32>
    %c0_20 = arith.constant 0 : index
    %c0_21 = arith.constant 0 : index
    %c0_22 = arith.constant 0 : index
    %26 = vector.load %arg11[%c0_20, %c0_21, %c0_22] : memref<2x8x128xf32, #tpu.memory_space<vmem>>, vector<1x8x128xf32>
    %27 = vector.shape_cast %26 : vector<1x8x128xf32> to vector<8x128xf32>
    %cst_23 = arith.constant 9.99999997E-7 : f32
    %c0_i32_24 = arith.constant 0 : i32
    %28 = arith.index_cast %c0_i32_24 : i32 to index
    %c0_25 = arith.constant 0 : index
    %c0_26 = arith.constant 0 : index
    %29 = vector.load %arg12[%28, %c0_25, %c0_26] : memref<8x8x128xf32, #tpu.memory_space<vmem>>, vector<1x8x128xf32>
    %30 = vector.shape_cast %29 : vector<1x8x128xf32> to vector<8x128xf32>
    %31 = arith.mulf %17, %27 : vector<8x128xf32>
    %32 = arith.addf %30, %31 : vector<8x128xf32>
    %cst_27 = arith.constant dense<0.000000e+00> : vector<8xf32>
    %33 = vector.multi_reduction <add>, %32, %cst_27 [1] : vector<8x128xf32> to vector<8xf32>
    %34 = vector.shape_cast %33 : vector<8xf32> to vector<8x1xf32>
    %35 = arith.mulf %32, %32 : vector<8x128xf32>
    %cst_28 = arith.constant dense<0.000000e+00> : vector<8xf32>
    %36 = vector.multi_reduction <add>, %35, %cst_28 [1] : vector<8x128xf32> to vector<8xf32>
    %37 = vector.shape_cast %36 : vector<8xf32> to vector<8x1xf32>
    %cst_29 = arith.constant 3.125000e-02 : f32
    %38 = vector.broadcast %cst_29 : f32 to vector<8x1xf32>
    %39 = arith.mulf %34, %38 : vector<8x1xf32>
    %cst_30 = arith.constant 3.125000e-02 : f32
    %40 = vector.broadcast %cst_30 : f32 to vector<8x1xf32>
    %41 = arith.mulf %37, %40 : vector<8x1xf32>
    %42 = arith.mulf %39, %39 : vector<8x1xf32>
    %43 = arith.subf %41, %42 : vector<8x1xf32>
    %cst_31 = arith.constant 0.000000e+00 : f32
    %44 = vector.broadcast %cst_31 : f32 to vector<8x1xf32>
    %45 = arith.maximumf %43, %44 : vector<8x1xf32>
    %46 = vector.broadcast %39 : vector<8x1xf32> to vector<8x128xf32>
    %47 = arith.subf %32, %46 : vector<8x128xf32>
    %48 = vector.broadcast %cst_23 : f32 to vector<8x1xf32>
    %49 = arith.addf %45, %48 : vector<8x1xf32>
    %50 = math.rsqrt %49 : vector<8x1xf32>
    %51 = vector.broadcast %50 : vector<8x1xf32> to vector<8x128xf32>
    %52 = arith.mulf %47, %51 : vector<8x128xf32>
    %53 = arith.mulf %52, %21 : vector<8x128xf32>
    %54 = arith.addf %53, %25 : vector<8x128xf32>
    %cst_32 = arith.constant 0.000000e+00 : f32
    %cst_33 = arith.constant 6.000000e+00 : f32
    %55 = vector.broadcast %cst_32 : f32 to vector<8x128xf32>
    %56 = arith.maximumf %55, %54 : vector<8x128xf32>
    %57 = vector.broadcast %cst_33 : f32 to vector<8x128xf32>
    %58 = arith.minimumf %57, %56 : vector<8x128xf32>
    %59 = arith.index_cast %c0_i32_24 : i32 to index
    %c0_34 = arith.constant 0 : index
    %c0_35 = arith.constant 0 : index
    %60 = vector.load %arg12[%59, %c0_34, %c0_35] : memref<8x8x128xf32, #tpu.memory_space<vmem>>, vector<1x8x128xf32>
    %61 = vector.shape_cast %60 : vector<1x8x128xf32> to vector<8x128xf32>
    %62 = vector.shape_cast %58 : vector<8x128xf32> to vector<1x8x128xf32>
    tpu.vector_store %arg12[%59, %c0_34, %c0_35], %62 {strides = array<i32>} : memref<8x8x128xf32, #tpu.memory_space<vmem>>, vector<1x8x128xf32>,
    %c1_i32 = arith.constant 1 : i32
    %63 = arith.index_cast %c1_i32 : i32 to index
    %c0_36 = arith.constant 0 : index
    %c0_37 = arith.constant 0 : index
    %64 = vector.load %arg12[%63, %c0_36, %c0_37] : memref<8x8x128xf32, #tpu.memory_space<vmem>>, vector<1x8x128xf32>
    %65 = vector.shape_cast %64 : vector<1x8x128xf32> to vector<8x128xf32>
    %66 = arith.mulf %17, %58 : vector<8x128xf32>
    %67 = arith.addf %65, %66 : vector<8x128xf32>
    %cst_38 = arith.constant dense<0.000000e+00> : vector<8xf32>
    %68 = vector.multi_reduction <add>, %67, %cst_38 [1] : vector<8x128xf32> to vector<8xf32>
    %69 = vector.shape_cast %68 : vector<8xf32> to vector<8x1xf32>
    %70 = arith.mulf %67, %67 : vector<8x128xf32>
    %cst_39 = arith.constant dense<0.000000e+00> : vector<8xf32>
    %71 = vector.multi_reduction <add>, %70, %cst_39 [1] : vector<8x128xf32> to vector<8xf32>
    %72 = vector.shape_cast %71 : vector<8xf32> to vector<8x1xf32>
    %cst_40 = arith.constant 3.125000e-02 : f32
    %73 = vector.broadcast %cst_40 : f32 to vector<8x1xf32>
    %74 = arith.mulf %69, %73 : vector<8x1xf32>
    %cst_41 = arith.constant 3.125000e-02 : f32
    %75 = vector.broadcast %cst_41 : f32 to vector<8x1xf32>
    %76 = arith.mulf %72, %75 : vector<8x1xf32>
    %77 = arith.mulf %74, %74 : vector<8x1xf32>
    %78 = arith.subf %76, %77 : vector<8x1xf32>
    %cst_42 = arith.constant 0.000000e+00 : f32
    %79 = vector.broadcast %cst_42 : f32 to vector<8x1xf32>
    %80 = arith.maximumf %78, %79 : vector<8x1xf32>
    %81 = vector.broadcast %74 : vector<8x1xf32> to vector<8x128xf32>
    %82 = arith.subf %67, %81 : vector<8x128xf32>
    %83 = vector.broadcast %cst_23 : f32 to vector<8x1xf32>
    %84 = arith.addf %80, %83 : vector<8x1xf32>
    %85 = math.rsqrt %84 : vector<8x1xf32>
    %86 = vector.broadcast %85 : vector<8x1xf32> to vector<8x128xf32>
    %87 = arith.mulf %82, %86 : vector<8x128xf32>
    %88 = arith.mulf %87, %21 : vector<8x128xf32>
    %89 = arith.addf %88, %25 : vector<8x128xf32>
    %cst_43 = arith.constant 0.000000e+00 : f32
    %cst_44 = arith.constant 6.000000e+00 : f32
    %90 = vector.broadcast %cst_43 : f32 to vector<8x128xf32>
    %91 = arith.maximumf %90, %89 : vector<8x128xf32>
    %92 = vector.broadcast %cst_44 : f32 to vector<8x128xf32>
    %93 = arith.minimumf %92, %91 : vector<8x128xf32>
    %94 = arith.index_cast %c1_i32 : i32 to index
    %c0_45 = arith.constant 0 : index
    %c0_46 = arith.constant 0 : index
    %95 = vector.load %arg12[%94, %c0_45, %c0_46] : memref<8x8x128xf32, #tpu.memory_space<vmem>>, vector<1x8x128xf32>
    %96 = vector.shape_cast %95 : vector<1x8x128xf32> to vector<8x128xf32>
    %97 = vector.shape_cast %93 : vector<8x128xf32> to vector<1x8x128xf32>
    tpu.vector_store %arg12[%94, %c0_45, %c0_46], %97 {strides = array<i32>} : memref<8x8x128xf32, #tpu.memory_space<vmem>>, vector<1x8x128xf32>,
    %c2_i32 = arith.constant 2 : i32
    %98 = arith.index_cast %c2_i32 : i32 to index
    %c0_47 = arith.constant 0 : index
    %c0_48 = arith.constant 0 : index
    %99 = vector.load %arg12[%98, %c0_47, %c0_48] : memref<8x8x128xf32, #tpu.memory_space<vmem>>, vector<1x8x128xf32>
    %100 = vector.shape_cast %99 : vector<1x8x128xf32> to vector<8x128xf32>
    %101 = arith.mulf %17, %93 : vector<8x128xf32>
    %102 = arith.addf %100, %101 : vector<8x128xf32>
    %cst_49 = arith.constant dense<0.000000e+00> : vector<8xf32>
    %103 = vector.multi_reduction <add>, %102, %cst_49 [1] : vector<8x128xf32> to vector<8xf32>
    %104 = vector.shape_cast %103 : vector<8xf32> to vector<8x1xf32>
    %105 = arith.mulf %102, %102 : vector<8x128xf32>
    %cst_50 = arith.constant dense<0.000000e+00> : vector<8xf32>
    %106 = vector.multi_reduction <add>, %105, %cst_50 [1] : vector<8x128xf32> to vector<8xf32>
    %107 = vector.shape_cast %106 : vector<8xf32> to vector<8x1xf32>
    %cst_51 = arith.constant 3.125000e-02 : f32
    %108 = vector.broadcast %cst_51 : f32 to vector<8x1xf32>
    %109 = arith.mulf %104, %108 : vector<8x1xf32>
    %cst_52 = arith.constant 3.125000e-02 : f32
    %110 = vector.broadcast %cst_52 : f32 to vector<8x1xf32>
    %111 = arith.mulf %107, %110 : vector<8x1xf32>
    %112 = arith.mulf %109, %109 : vector<8x1xf32>
    %113 = arith.subf %111, %112 : vector<8x1xf32>
    %cst_53 = arith.constant 0.000000e+00 : f32
    %114 = vector.broadcast %cst_53 : f32 to vector<8x1xf32>
    %115 = arith.maximumf %113, %114 : vector<8x1xf32>
    %116 = vector.broadcast %109 : vector<8x1xf32> to vector<8x128xf32>
    %117 = arith.subf %102, %116 : vector<8x128xf32>
    %118 = vector.broadcast %cst_23 : f32 to vector<8x1xf32>
    %119 = arith.addf %115, %118 : vector<8x1xf32>
    %120 = math.rsqrt %119 : vector<8x1xf32>
    %121 = vector.broadcast %120 : vector<8x1xf32> to vector<8x128xf32>
    %122 = arith.mulf %117, %121 : vector<8x128xf32>
    %123 = arith.mulf %122, %21 : vector<8x128xf32>
    %124 = arith.addf %123, %25 : vector<8x128xf32>
    %cst_54 = arith.constant 0.000000e+00 : f32
    %cst_55 = arith.constant 6.000000e+00 : f32
    %125 = vector.broadcast %cst_54 : f32 to vector<8x128xf32>
    %126 = arith.maximumf %125, %124 : vector<8x128xf32>
    %127 = vector.broadcast %cst_55 : f32 to vector<8x128xf32>
    %128 = arith.minimumf %127, %126 : vector<8x128xf32>
    %129 = arith.index_cast %c2_i32 : i32 to index
    %c0_56 = arith.constant 0 : index
    %c0_57 = arith.constant 0 : index
    %130 = vector.load %arg12[%129, %c0_56, %c0_57] : memref<8x8x128xf32, #tpu.memory_space<vmem>>, vector<1x8x128xf32>
    %131 = vector.shape_cast %130 : vector<1x8x128xf32> to vector<8x128xf32>
    %132 = vector.shape_cast %128 : vector<8x128xf32> to vector<1x8x128xf32>
    tpu.vector_store %arg12[%129, %c0_56, %c0_57], %132 {strides = array<i32>} : memref<8x8x128xf32, #tpu.memory_space<vmem>>, vector<1x8x128xf32>,
    %c3_i32 = arith.constant 3 : i32
    %133 = arith.index_cast %c3_i32 : i32 to index
    %c0_58 = arith.constant 0 : index
    %c0_59 = arith.constant 0 : index
    %134 = vector.load %arg12[%133, %c0_58, %c0_59] : memref<8x8x128xf32, #tpu.memory_space<vmem>>, vector<1x8x128xf32>
    %135 = vector.shape_cast %134 : vector<1x8x128xf32> to vector<8x128xf32>
    %136 = arith.mulf %17, %128 : vector<8x128xf32>
    %137 = arith.addf %135, %136 : vector<8x128xf32>
    %cst_60 = arith.constant dense<0.000000e+00> : vector<8xf32>
    %138 = vector.multi_reduction <add>, %137, %cst_60 [1] : vector<8x128xf32> to vector<8xf32>
    %139 = vector.shape_cast %138 : vector<8xf32> to vector<8x1xf32>
    %140 = arith.mulf %137, %137 : vector<8x128xf32>
    %cst_61 = arith.constant dense<0.000000e+00> : vector<8xf32>
    %141 = vector.multi_reduction <add>, %140, %cst_61 [1] : vector<8x128xf32> to vector<8xf32>
    %142 = vector.shape_cast %141 : vector<8xf32> to vector<8x1xf32>
    %cst_62 = arith.constant 3.125000e-02 : f32
    %143 = vector.broadcast %cst_62 : f32 to vector<8x1xf32>
    %144 = arith.mulf %139, %143 : vector<8x1xf32>
    %cst_63 = arith.constant 3.125000e-02 : f32
    %145 = vector.broadcast %cst_63 : f32 to vector<8x1xf32>
    %146 = arith.mulf %142, %145 : vector<8x1xf32>
    %147 = arith.mulf %144, %144 : vector<8x1xf32>
    %148 = arith.subf %146, %147 : vector<8x1xf32>
    %cst_64 = arith.constant 0.000000e+00 : f32
    %149 = vector.broadcast %cst_64 : f32 to vector<8x1xf32>
    %150 = arith.maximumf %148, %149 : vector<8x1xf32>
    %151 = vector.broadcast %144 : vector<8x1xf32> to vector<8x128xf32>
    %152 = arith.subf %137, %151 : vector<8x128xf32>
    %153 = vector.broadcast %cst_23 : f32 to vector<8x1xf32>
    %154 = arith.addf %150, %153 : vector<8x1xf32>
    %155 = math.rsqrt %154 : vector<8x1xf32>
    %156 = vector.broadcast %155 : vector<8x1xf32> to vector<8x128xf32>
    %157 = arith.mulf %152, %156 : vector<8x128xf32>
    %158 = arith.mulf %157, %21 : vector<8x128xf32>
    %159 = arith.addf %158, %25 : vector<8x128xf32>
    %cst_65 = arith.constant 0.000000e+00 : f32
    %cst_66 = arith.constant 6.000000e+00 : f32
    %160 = vector.broadcast %cst_65 : f32 to vector<8x128xf32>
    %161 = arith.maximumf %160, %159 : vector<8x128xf32>
    %162 = vector.broadcast %cst_66 : f32 to vector<8x128xf32>
    %163 = arith.minimumf %162, %161 : vector<8x128xf32>
    %164 = arith.index_cast %c3_i32 : i32 to index
    %c0_67 = arith.constant 0 : index
    %c0_68 = arith.constant 0 : index
    %165 = vector.load %arg12[%164, %c0_67, %c0_68] : memref<8x8x128xf32, #tpu.memory_space<vmem>>, vector<1x8x128xf32>
    %166 = vector.shape_cast %165 : vector<1x8x128xf32> to vector<8x128xf32>
    %167 = vector.shape_cast %163 : vector<8x128xf32> to vector<1x8x128xf32>
    tpu.vector_store %arg12[%164, %c0_67, %c0_68], %167 {strides = array<i32>} : memref<8x8x128xf32, #tpu.memory_space<vmem>>, vector<1x8x128xf32>,
    %c4_i32 = arith.constant 4 : i32
    %168 = arith.index_cast %c4_i32 : i32 to index
    %c0_69 = arith.constant 0 : index
    %c0_70 = arith.constant 0 : index
    %169 = vector.load %arg12[%168, %c0_69, %c0_70] : memref<8x8x128xf32, #tpu.memory_space<vmem>>, vector<1x8x128xf32>
    %170 = vector.shape_cast %169 : vector<1x8x128xf32> to vector<8x128xf32>
    %171 = arith.mulf %17, %163 : vector<8x128xf32>
    %172 = arith.addf %170, %171 : vector<8x128xf32>
    %cst_71 = arith.constant dense<0.000000e+00> : vector<8xf32>
    %173 = vector.multi_reduction <add>, %172, %cst_71 [1] : vector<8x128xf32> to vector<8xf32>
    %174 = vector.shape_cast %173 : vector<8xf32> to vector<8x1xf32>
    %175 = arith.mulf %172, %172 : vector<8x128xf32>
    %cst_72 = arith.constant dense<0.000000e+00> : vector<8xf32>
    %176 = vector.multi_reduction <add>, %175, %cst_72 [1] : vector<8x128xf32> to vector<8xf32>
    %177 = vector.shape_cast %176 : vector<8xf32> to vector<8x1xf32>
    %cst_73 = arith.constant 3.125000e-02 : f32
    %178 = vector.broadcast %cst_73 : f32 to vector<8x1xf32>
    %179 = arith.mulf %174, %178 : vector<8x1xf32>
    %cst_74 = arith.constant 3.125000e-02 : f32
    %180 = vector.broadcast %cst_74 : f32 to vector<8x1xf32>
    %181 = arith.mulf %177, %180 : vector<8x1xf32>
    %182 = arith.mulf %179, %179 : vector<8x1xf32>
    %183 = arith.subf %181, %182 : vector<8x1xf32>
    %cst_75 = arith.constant 0.000000e+00 : f32
    %184 = vector.broadcast %cst_75 : f32 to vector<8x1xf32>
    %185 = arith.maximumf %183, %184 : vector<8x1xf32>
    %186 = vector.broadcast %179 : vector<8x1xf32> to vector<8x128xf32>
    %187 = arith.subf %172, %186 : vector<8x128xf32>
    %188 = vector.broadcast %cst_23 : f32 to vector<8x1xf32>
    %189 = arith.addf %185, %188 : vector<8x1xf32>
    %190 = math.rsqrt %189 : vector<8x1xf32>
    %191 = vector.broadcast %190 : vector<8x1xf32> to vector<8x128xf32>
    %192 = arith.mulf %187, %191 : vector<8x128xf32>
    %193 = arith.mulf %192, %21 : vector<8x128xf32>
    %194 = arith.addf %193, %25 : vector<8x128xf32>
    %cst_76 = arith.constant 0.000000e+00 : f32
    %cst_77 = arith.constant 6.000000e+00 : f32
    %195 = vector.broadcast %cst_76 : f32 to vector<8x128xf32>
    %196 = arith.maximumf %195, %194 : vector<8x128xf32>
    %197 = vector.broadcast %cst_77 : f32 to vector<8x128xf32>
    %198 = arith.minimumf %197, %196 : vector<8x128xf32>
    %199 = arith.index_cast %c4_i32 : i32 to index
    %c0_78 = arith.constant 0 : index
    %c0_79 = arith.constant 0 : index
    %200 = vector.load %arg12[%199, %c0_78, %c0_79] : memref<8x8x128xf32, #tpu.memory_space<vmem>>, vector<1x8x128xf32>
    %201 = vector.shape_cast %200 : vector<1x8x128xf32> to vector<8x128xf32>
    %202 = vector.shape_cast %198 : vector<8x128xf32> to vector<1x8x128xf32>
    tpu.vector_store %arg12[%199, %c0_78, %c0_79], %202 {strides = array<i32>} : memref<8x8x128xf32, #tpu.memory_space<vmem>>, vector<1x8x128xf32>,
    %c5_i32 = arith.constant 5 : i32
    %203 = arith.index_cast %c5_i32 : i32 to index
    %c0_80 = arith.constant 0 : index
    %c0_81 = arith.constant 0 : index
    %204 = vector.load %arg12[%203, %c0_80, %c0_81] : memref<8x8x128xf32, #tpu.memory_space<vmem>>, vector<1x8x128xf32>
    %205 = vector.shape_cast %204 : vector<1x8x128xf32> to vector<8x128xf32>
    %206 = arith.mulf %17, %198 : vector<8x128xf32>
    %207 = arith.addf %205, %206 : vector<8x128xf32>
    %cst_82 = arith.constant dense<0.000000e+00> : vector<8xf32>
    %208 = vector.multi_reduction <add>, %207, %cst_82 [1] : vector<8x128xf32> to vector<8xf32>
    %209 = vector.shape_cast %208 : vector<8xf32> to vector<8x1xf32>
    %210 = arith.mulf %207, %207 : vector<8x128xf32>
    %cst_83 = arith.constant dense<0.000000e+00> : vector<8xf32>
    %211 = vector.multi_reduction <add>, %210, %cst_83 [1] : vector<8x128xf32> to vector<8xf32>
    %212 = vector.shape_cast %211 : vector<8xf32> to vector<8x1xf32>
    %cst_84 = arith.constant 3.125000e-02 : f32
    %213 = vector.broadcast %cst_84 : f32 to vector<8x1xf32>
    %214 = arith.mulf %209, %213 : vector<8x1xf32>
    %cst_85 = arith.constant 3.125000e-02 : f32
    %215 = vector.broadcast %cst_85 : f32 to vector<8x1xf32>
    %216 = arith.mulf %212, %215 : vector<8x1xf32>
    %217 = arith.mulf %214, %214 : vector<8x1xf32>
    %218 = arith.subf %216, %217 : vector<8x1xf32>
    %cst_86 = arith.constant 0.000000e+00 : f32
    %219 = vector.broadcast %cst_86 : f32 to vector<8x1xf32>
    %220 = arith.maximumf %218, %219 : vector<8x1xf32>
    %221 = vector.broadcast %214 : vector<8x1xf32> to vector<8x128xf32>
    %222 = arith.subf %207, %221 : vector<8x128xf32>
    %223 = vector.broadcast %cst_23 : f32 to vector<8x1xf32>
    %224 = arith.addf %220, %223 : vector<8x1xf32>
    %225 = math.rsqrt %224 : vector<8x1xf32>
    %226 = vector.broadcast %225 : vector<8x1xf32> to vector<8x128xf32>
    %227 = arith.mulf %222, %226 : vector<8x128xf32>
    %228 = arith.mulf %227, %21 : vector<8x128xf32>
    %229 = arith.addf %228, %25 : vector<8x128xf32>
    %cst_87 = arith.constant 0.000000e+00 : f32
    %cst_88 = arith.constant 6.000000e+00 : f32
    %230 = vector.broadcast %cst_87 : f32 to vector<8x128xf32>
    %231 = arith.maximumf %230, %229 : vector<8x128xf32>
    %232 = vector.broadcast %cst_88 : f32 to vector<8x128xf32>
    %233 = arith.minimumf %232, %231 : vector<8x128xf32>
    %234 = arith.index_cast %c5_i32 : i32 to index
    %c0_89 = arith.constant 0 : index
    %c0_90 = arith.constant 0 : index
    %235 = vector.load %arg12[%234, %c0_89, %c0_90] : memref<8x8x128xf32, #tpu.memory_space<vmem>>, vector<1x8x128xf32>
    %236 = vector.shape_cast %235 : vector<1x8x128xf32> to vector<8x128xf32>
    %237 = vector.shape_cast %233 : vector<8x128xf32> to vector<1x8x128xf32>
    tpu.vector_store %arg12[%234, %c0_89, %c0_90], %237 {strides = array<i32>} : memref<8x8x128xf32, #tpu.memory_space<vmem>>, vector<1x8x128xf32>,
    %c6_i32 = arith.constant 6 : i32
    %238 = arith.index_cast %c6_i32 : i32 to index
    %c0_91 = arith.constant 0 : index
    %c0_92 = arith.constant 0 : index
    %239 = vector.load %arg12[%238, %c0_91, %c0_92] : memref<8x8x128xf32, #tpu.memory_space<vmem>>, vector<1x8x128xf32>
    %240 = vector.shape_cast %239 : vector<1x8x128xf32> to vector<8x128xf32>
    %241 = arith.mulf %17, %233 : vector<8x128xf32>
    %242 = arith.addf %240, %241 : vector<8x128xf32>
    %cst_93 = arith.constant dense<0.000000e+00> : vector<8xf32>
    %243 = vector.multi_reduction <add>, %242, %cst_93 [1] : vector<8x128xf32> to vector<8xf32>
    %244 = vector.shape_cast %243 : vector<8xf32> to vector<8x1xf32>
    %245 = arith.mulf %242, %242 : vector<8x128xf32>
    %cst_94 = arith.constant dense<0.000000e+00> : vector<8xf32>
    %246 = vector.multi_reduction <add>, %245, %cst_94 [1] : vector<8x128xf32> to vector<8xf32>
    %247 = vector.shape_cast %246 : vector<8xf32> to vector<8x1xf32>
    %cst_95 = arith.constant 3.125000e-02 : f32
    %248 = vector.broadcast %cst_95 : f32 to vector<8x1xf32>
    %249 = arith.mulf %244, %248 : vector<8x1xf32>
    %cst_96 = arith.constant 3.125000e-02 : f32
    %250 = vector.broadcast %cst_96 : f32 to vector<8x1xf32>
    %251 = arith.mulf %247, %250 : vector<8x1xf32>
    %252 = arith.mulf %249, %249 : vector<8x1xf32>
    %253 = arith.subf %251, %252 : vector<8x1xf32>
    %cst_97 = arith.constant 0.000000e+00 : f32
    %254 = vector.broadcast %cst_97 : f32 to vector<8x1xf32>
    %255 = arith.maximumf %253, %254 : vector<8x1xf32>
    %256 = vector.broadcast %249 : vector<8x1xf32> to vector<8x128xf32>
    %257 = arith.subf %242, %256 : vector<8x128xf32>
    %258 = vector.broadcast %cst_23 : f32 to vector<8x1xf32>
    %259 = arith.addf %255, %258 : vector<8x1xf32>
    %260 = math.rsqrt %259 : vector<8x1xf32>
    %261 = vector.broadcast %260 : vector<8x1xf32> to vector<8x128xf32>
    %262 = arith.mulf %257, %261 : vector<8x128xf32>
    %263 = arith.mulf %262, %21 : vector<8x128xf32>
    %264 = arith.addf %263, %25 : vector<8x128xf32>
    %cst_98 = arith.constant 0.000000e+00 : f32
    %cst_99 = arith.constant 6.000000e+00 : f32
    %265 = vector.broadcast %cst_98 : f32 to vector<8x128xf32>
    %266 = arith.maximumf %265, %264 : vector<8x128xf32>
    %267 = vector.broadcast %cst_99 : f32 to vector<8x128xf32>
    %268 = arith.minimumf %267, %266 : vector<8x128xf32>
    %269 = arith.index_cast %c6_i32 : i32 to index
    %c0_100 = arith.constant 0 : index
    %c0_101 = arith.constant 0 : index
    %270 = vector.load %arg12[%269, %c0_100, %c0_101] : memref<8x8x128xf32, #tpu.memory_space<vmem>>, vector<1x8x128xf32>
    %271 = vector.shape_cast %270 : vector<1x8x128xf32> to vector<8x128xf32>
    %272 = vector.shape_cast %268 : vector<8x128xf32> to vector<1x8x128xf32>
    tpu.vector_store %arg12[%269, %c0_100, %c0_101], %272 {strides = array<i32>} : memref<8x8x128xf32, #tpu.memory_space<vmem>>, vector<1x8x128xf32>,
    %c7_i32 = arith.constant 7 : i32
    %273 = arith.index_cast %c7_i32 : i32 to index
    %c0_102 = arith.constant 0 : index
    %c0_103 = arith.constant 0 : index
    %274 = vector.load %arg12[%273, %c0_102, %c0_103] : memref<8x8x128xf32, #tpu.memory_space<vmem>>, vector<1x8x128xf32>
    %275 = vector.shape_cast %274 : vector<1x8x128xf32> to vector<8x128xf32>
    %276 = arith.mulf %17, %268 : vector<8x128xf32>
    %277 = arith.addf %275, %276 : vector<8x128xf32>
    %cst_104 = arith.constant dense<0.000000e+00> : vector<8xf32>
    %278 = vector.multi_reduction <add>, %277, %cst_104 [1] : vector<8x128xf32> to vector<8xf32>
    %279 = vector.shape_cast %278 : vector<8xf32> to vector<8x1xf32>
    %280 = arith.mulf %277, %277 : vector<8x128xf32>
    %cst_105 = arith.constant dense<0.000000e+00> : vector<8xf32>
    %281 = vector.multi_reduction <add>, %280, %cst_105 [1] : vector<8x128xf32> to vector<8xf32>
    %282 = vector.shape_cast %281 : vector<8xf32> to vector<8x1xf32>
    %cst_106 = arith.constant 3.125000e-02 : f32
    %283 = vector.broadcast %cst_106 : f32 to vector<8x1xf32>
    %284 = arith.mulf %279, %283 : vector<8x1xf32>
    %cst_107 = arith.constant 3.125000e-02 : f32
    %285 = vector.broadcast %cst_107 : f32 to vector<8x1xf32>
    %286 = arith.mulf %282, %285 : vector<8x1xf32>
    %287 = arith.mulf %284, %284 : vector<8x1xf32>
    %288 = arith.subf %286, %287 : vector<8x1xf32>
    %cst_108 = arith.constant 0.000000e+00 : f32
    %289 = vector.broadcast %cst_108 : f32 to vector<8x1xf32>
    %290 = arith.maximumf %288, %289 : vector<8x1xf32>
    %291 = vector.broadcast %284 : vector<8x1xf32> to vector<8x128xf32>
    %292 = arith.subf %277, %291 : vector<8x128xf32>
    %293 = vector.broadcast %cst_23 : f32 to vector<8x1xf32>
    %294 = arith.addf %290, %293 : vector<8x1xf32>
    %295 = math.rsqrt %294 : vector<8x1xf32>
    %296 = vector.broadcast %295 : vector<8x1xf32> to vector<8x128xf32>
    %297 = arith.mulf %292, %296 : vector<8x128xf32>
    %298 = arith.mulf %297, %21 : vector<8x128xf32>
    %299 = arith.addf %298, %25 : vector<8x128xf32>
    %cst_109 = arith.constant 0.000000e+00 : f32
    %cst_110 = arith.constant 6.000000e+00 : f32
    %300 = vector.broadcast %cst_109 : f32 to vector<8x128xf32>
    %301 = arith.maximumf %300, %299 : vector<8x128xf32>
    %302 = vector.broadcast %cst_110 : f32 to vector<8x128xf32>
    %303 = arith.minimumf %302, %301 : vector<8x128xf32>
    %304 = arith.index_cast %c7_i32 : i32 to index
    %c0_111 = arith.constant 0 : index
    %c0_112 = arith.constant 0 : index
    %305 = vector.load %arg12[%304, %c0_111, %c0_112] : memref<8x8x128xf32, #tpu.memory_space<vmem>>, vector<1x8x128xf32>
    %306 = vector.shape_cast %305 : vector<1x8x128xf32> to vector<8x128xf32>
    %307 = vector.shape_cast %303 : vector<8x128xf32> to vector<1x8x128xf32>
    tpu.vector_store %arg12[%304, %c0_111, %c0_112], %307 {strides = array<i32>} : memref<8x8x128xf32, #tpu.memory_space<vmem>>, vector<1x8x128xf32>,
    %c8_i32 = arith.constant 8 : i32
    %c0_113 = arith.constant 0 : index
    %c0_114 = arith.constant 0 : index
    %c0_115 = arith.constant 0 : index
    %308 = vector.load %arg11[%c0_113, %c0_114, %c0_115] : memref<2x8x128xf32, #tpu.memory_space<vmem>>, vector<1x8x128xf32>
    %309 = vector.shape_cast %308 : vector<1x8x128xf32> to vector<8x128xf32>
    %310 = vector.shape_cast %303 : vector<8x128xf32> to vector<1x8x128xf32>
    tpu.vector_store %arg11[%c0_113, %c0_114, %c0_115], %310 {strides = array<i32>} : memref<2x8x128xf32, #tpu.memory_space<vmem>>, vector<1x8x128xf32>,
    %c0_i32_116 = arith.constant 0 : i32
    %311 = arith.cmpi eq, %arg1, %c0_i32_116 : i32
    %312 = arith.extui %311 : i1 to i32
    %c0_i32_117 = arith.constant 0 : i32
    %313 = arith.cmpi ne, %312, %c0_i32_117 : i32
    scf.if %313 {
      %c7 = arith.constant 7 : index
      %c0_245 = arith.constant 0 : index
      %c0_246 = arith.constant 0 : index
      %626 = vector.load %arg12[%c7, %c0_245, %c0_246] : memref<8x8x128xf32, #tpu.memory_space<vmem>>, vector<1x8x128xf32>
      %627 = vector.shape_cast %626 : vector<1x8x128xf32> to vector<8x128xf32>
      %c0_247 = arith.constant 0 : index
      %c0_248 = arith.constant 0 : index
      %c0_249 = arith.constant 0 : index
      %628 = vector.load %arg10[%c0_247, %c0_248, %c0_249] : memref<2x8x128xf32, #tpu.memory_space<vmem>>, vector<1x8x128xf32>
      %629 = vector.shape_cast %628 : vector<1x8x128xf32> to vector<8x128xf32>
      %630 = vector.shape_cast %627 : vector<8x128xf32> to vector<1x8x128xf32>
      tpu.vector_store %arg10[%c0_247, %c0_248, %c0_249], %630 {strides = array<i32>} : memref<2x8x128xf32, #tpu.memory_space<vmem>>, vector<1x8x128xf32>,
    } else {
    }
    %c0_118 = arith.constant 0 : index
    %c0_119 = arith.constant 0 : index
    %c0_120 = arith.constant 0 : index
    %314 = vector.load %arg4[%c0_118, %c0_119, %c0_120] : memref<1x128x128xf32, #tpu.memory_space<vmem>>, vector<1x128x128xf32>
    %315 = vector.shape_cast %314 : vector<1x128x128xf32> to vector<128x128xf32>
    %c0_121 = arith.constant 0 : index
    %c0_122 = arith.constant 0 : index
    %c0_123 = arith.constant 0 : index
    %316 = vector.load %arg12[%c0_121, %c0_122, %c0_123] : memref<8x8x128xf32, #tpu.memory_space<vmem>>, vector<8x8x128xf32>
    %317 = vector.shape_cast %316 : vector<8x8x128xf32> to vector<64x128xf32>
    %cst_124 = arith.constant dense<0.000000e+00> : vector<64x128xf32>
    %318 = tpu.matmul %317, %315, %cst_124 {dimension_numbers = #tpu.dot_dimension_numbers<[1], [0], [0], [1], [0, 0, 1, 1], [], []>} : vector<64x128xf32>, vector<128x128xf32>, vector<64x128xf32> -> vector<64x128xf32>
    %319 = vector.shape_cast %318 : vector<64x128xf32> to vector<8x8x128xf32>
    %c1 = arith.constant 1 : index
    %c0_125 = arith.constant 0 : index
    %c0_126 = arith.constant 0 : index
    %320 = vector.load %arg5[%c1, %c0_125, %c0_126] : memref<2x1x128xf32, #tpu.memory_space<vmem>>, vector<1x1x128xf32>
    %321 = vector.shape_cast %320 : vector<1x1x128xf32> to vector<1x128xf32>
    %322 = vector.shape_cast %321 : vector<1x128xf32> to vector<1x1x128xf32>
    %323 = vector.broadcast %322 : vector<1x1x128xf32> to vector<8x8x128xf32>
    %324 = arith.addf %319, %323 : vector<8x8x128xf32>
    %c0_127 = arith.constant 0 : index
    %c0_128 = arith.constant 0 : index
    %c0_129 = arith.constant 0 : index
    %325 = vector.load %arg9[%c0_127, %c0_128, %c0_129] : memref<8x8x128xf32, #tpu.memory_space<vmem>>, vector<8x8x128xf32>
    tpu.vector_store %arg9[%c0_127, %c0_128, %c0_129], %324 {strides = array<i32>} : memref<8x8x128xf32, #tpu.memory_space<vmem>>, vector<8x8x128xf32>,
    %c1_130 = arith.constant 1 : index
    %c0_131 = arith.constant 0 : index
    %c0_132 = arith.constant 0 : index
    %326 = vector.load %arg6[%c1_130, %c0_131, %c0_132] : memref<2x1x128xf32, #tpu.memory_space<vmem>>, vector<1x1x128xf32>
    %327 = vector.shape_cast %326 : vector<1x1x128xf32> to vector<1x128xf32>
    %328 = vector.shape_cast %327 : vector<1x128xf32> to vector<1x128xf32>
    %329 = vector.broadcast %328 : vector<1x128xf32> to vector<8x128xf32>
    %c1_133 = arith.constant 1 : index
    %c0_134 = arith.constant 0 : index
    %c0_135 = arith.constant 0 : index
    %330 = vector.load %arg7[%c1_133, %c0_134, %c0_135] : memref<2x1x128xf32, #tpu.memory_space<vmem>>, vector<1x1x128xf32>
    %331 = vector.shape_cast %330 : vector<1x1x128xf32> to vector<1x128xf32>
    %332 = vector.shape_cast %331 : vector<1x128xf32> to vector<1x128xf32>
    %333 = vector.broadcast %332 : vector<1x128xf32> to vector<8x128xf32>
    %c1_136 = arith.constant 1 : index
    %c0_137 = arith.constant 0 : index
    %c0_138 = arith.constant 0 : index
    %334 = vector.load %arg8[%c1_136, %c0_137, %c0_138] : memref<2x1x128xf32, #tpu.memory_space<vmem>>, vector<1x1x128xf32>
    %335 = vector.shape_cast %334 : vector<1x1x128xf32> to vector<1x128xf32>
    %336 = vector.shape_cast %335 : vector<1x128xf32> to vector<1x128xf32>
    %337 = vector.broadcast %336 : vector<1x128xf32> to vector<8x128xf32>
    %c1_139 = arith.constant 1 : index
    %c0_140 = arith.constant 0 : index
    %c0_141 = arith.constant 0 : index
    %338 = vector.load %arg11[%c1_139, %c0_140, %c0_141] : memref<2x8x128xf32, #tpu.memory_space<vmem>>, vector<1x8x128xf32>
    %339 = vector.shape_cast %338 : vector<1x8x128xf32> to vector<8x128xf32>
    %cst_142 = arith.constant 9.99999997E-7 : f32
    %c0_i32_143 = arith.constant 0 : i32
    %340 = arith.index_cast %c0_i32_143 : i32 to index
    %c0_144 = arith.constant 0 : index
    %c0_145 = arith.constant 0 : index
    %341 = vector.load %arg9[%340, %c0_144, %c0_145] : memref<8x8x128xf32, #tpu.memory_space<vmem>>, vector<1x8x128xf32>
    %342 = vector.shape_cast %341 : vector<1x8x128xf32> to vector<8x128xf32>
    %343 = arith.mulf %329, %339 : vector<8x128xf32>
    %344 = arith.addf %342, %343 : vector<8x128xf32>
    %cst_146 = arith.constant dense<0.000000e+00> : vector<8xf32>
    %345 = vector.multi_reduction <add>, %344, %cst_146 [1] : vector<8x128xf32> to vector<8xf32>
    %346 = vector.shape_cast %345 : vector<8xf32> to vector<8x1xf32>
    %347 = arith.mulf %344, %344 : vector<8x128xf32>
    %cst_147 = arith.constant dense<0.000000e+00> : vector<8xf32>
    %348 = vector.multi_reduction <add>, %347, %cst_147 [1] : vector<8x128xf32> to vector<8xf32>
    %349 = vector.shape_cast %348 : vector<8xf32> to vector<8x1xf32>
    %cst_148 = arith.constant 3.125000e-02 : f32
    %350 = vector.broadcast %cst_148 : f32 to vector<8x1xf32>
    %351 = arith.mulf %346, %350 : vector<8x1xf32>
    %cst_149 = arith.constant 3.125000e-02 : f32
    %352 = vector.broadcast %cst_149 : f32 to vector<8x1xf32>
    %353 = arith.mulf %349, %352 : vector<8x1xf32>
    %354 = arith.mulf %351, %351 : vector<8x1xf32>
    %355 = arith.subf %353, %354 : vector<8x1xf32>
    %cst_150 = arith.constant 0.000000e+00 : f32
    %356 = vector.broadcast %cst_150 : f32 to vector<8x1xf32>
    %357 = arith.maximumf %355, %356 : vector<8x1xf32>
    %358 = vector.broadcast %351 : vector<8x1xf32> to vector<8x128xf32>
    %359 = arith.subf %344, %358 : vector<8x128xf32>
    %360 = vector.broadcast %cst_142 : f32 to vector<8x1xf32>
    %361 = arith.addf %357, %360 : vector<8x1xf32>
    %362 = math.rsqrt %361 : vector<8x1xf32>
    %363 = vector.broadcast %362 : vector<8x1xf32> to vector<8x128xf32>
    %364 = arith.mulf %359, %363 : vector<8x128xf32>
    %365 = arith.mulf %364, %333 : vector<8x128xf32>
    %366 = arith.addf %365, %337 : vector<8x128xf32>
    %cst_151 = arith.constant 0.000000e+00 : f32
    %cst_152 = arith.constant 6.000000e+00 : f32
    %367 = vector.broadcast %cst_151 : f32 to vector<8x128xf32>
    %368 = arith.maximumf %367, %366 : vector<8x128xf32>
    %369 = vector.broadcast %cst_152 : f32 to vector<8x128xf32>
    %370 = arith.minimumf %369, %368 : vector<8x128xf32>
    %371 = arith.index_cast %c0_i32_143 : i32 to index
    %c0_153 = arith.constant 0 : index
    %c0_154 = arith.constant 0 : index
    %372 = vector.load %arg9[%371, %c0_153, %c0_154] : memref<8x8x128xf32, #tpu.memory_space<vmem>>, vector<1x8x128xf32>
    %373 = vector.shape_cast %372 : vector<1x8x128xf32> to vector<8x128xf32>
    %374 = vector.shape_cast %370 : vector<8x128xf32> to vector<1x8x128xf32>
    tpu.vector_store %arg9[%371, %c0_153, %c0_154], %374 {strides = array<i32>} : memref<8x8x128xf32, #tpu.memory_space<vmem>>, vector<1x8x128xf32>,
    %c1_i32_155 = arith.constant 1 : i32
    %375 = arith.index_cast %c1_i32_155 : i32 to index
    %c0_156 = arith.constant 0 : index
    %c0_157 = arith.constant 0 : index
    %376 = vector.load %arg9[%375, %c0_156, %c0_157] : memref<8x8x128xf32, #tpu.memory_space<vmem>>, vector<1x8x128xf32>
    %377 = vector.shape_cast %376 : vector<1x8x128xf32> to vector<8x128xf32>
    %378 = arith.mulf %329, %370 : vector<8x128xf32>
    %379 = arith.addf %377, %378 : vector<8x128xf32>
    %cst_158 = arith.constant dense<0.000000e+00> : vector<8xf32>
    %380 = vector.multi_reduction <add>, %379, %cst_158 [1] : vector<8x128xf32> to vector<8xf32>
    %381 = vector.shape_cast %380 : vector<8xf32> to vector<8x1xf32>
    %382 = arith.mulf %379, %379 : vector<8x128xf32>
    %cst_159 = arith.constant dense<0.000000e+00> : vector<8xf32>
    %383 = vector.multi_reduction <add>, %382, %cst_159 [1] : vector<8x128xf32> to vector<8xf32>
    %384 = vector.shape_cast %383 : vector<8xf32> to vector<8x1xf32>
    %cst_160 = arith.constant 3.125000e-02 : f32
    %385 = vector.broadcast %cst_160 : f32 to vector<8x1xf32>
    %386 = arith.mulf %381, %385 : vector<8x1xf32>
    %cst_161 = arith.constant 3.125000e-02 : f32
    %387 = vector.broadcast %cst_161 : f32 to vector<8x1xf32>
    %388 = arith.mulf %384, %387 : vector<8x1xf32>
    %389 = arith.mulf %386, %386 : vector<8x1xf32>
    %390 = arith.subf %388, %389 : vector<8x1xf32>
    %cst_162 = arith.constant 0.000000e+00 : f32
    %391 = vector.broadcast %cst_162 : f32 to vector<8x1xf32>
    %392 = arith.maximumf %390, %391 : vector<8x1xf32>
    %393 = vector.broadcast %386 : vector<8x1xf32> to vector<8x128xf32>
    %394 = arith.subf %379, %393 : vector<8x128xf32>
    %395 = vector.broadcast %cst_142 : f32 to vector<8x1xf32>
    %396 = arith.addf %392, %395 : vector<8x1xf32>
    %397 = math.rsqrt %396 : vector<8x1xf32>
    %398 = vector.broadcast %397 : vector<8x1xf32> to vector<8x128xf32>
    %399 = arith.mulf %394, %398 : vector<8x128xf32>
    %400 = arith.mulf %399, %333 : vector<8x128xf32>
    %401 = arith.addf %400, %337 : vector<8x128xf32>
    %cst_163 = arith.constant 0.000000e+00 : f32
    %cst_164 = arith.constant 6.000000e+00 : f32
    %402 = vector.broadcast %cst_163 : f32 to vector<8x128xf32>
    %403 = arith.maximumf %402, %401 : vector<8x128xf32>
    %404 = vector.broadcast %cst_164 : f32 to vector<8x128xf32>
    %405 = arith.minimumf %404, %403 : vector<8x128xf32>
    %406 = arith.index_cast %c1_i32_155 : i32 to index
    %c0_165 = arith.constant 0 : index
    %c0_166 = arith.constant 0 : index
    %407 = vector.load %arg9[%406, %c0_165, %c0_166] : memref<8x8x128xf32, #tpu.memory_space<vmem>>, vector<1x8x128xf32>
    %408 = vector.shape_cast %407 : vector<1x8x128xf32> to vector<8x128xf32>
    %409 = vector.shape_cast %405 : vector<8x128xf32> to vector<1x8x128xf32>
    tpu.vector_store %arg9[%406, %c0_165, %c0_166], %409 {strides = array<i32>} : memref<8x8x128xf32, #tpu.memory_space<vmem>>, vector<1x8x128xf32>,
    %c2_i32_167 = arith.constant 2 : i32
    %410 = arith.index_cast %c2_i32_167 : i32 to index
    %c0_168 = arith.constant 0 : index
    %c0_169 = arith.constant 0 : index
    %411 = vector.load %arg9[%410, %c0_168, %c0_169] : memref<8x8x128xf32, #tpu.memory_space<vmem>>, vector<1x8x128xf32>
    %412 = vector.shape_cast %411 : vector<1x8x128xf32> to vector<8x128xf32>
    %413 = arith.mulf %329, %405 : vector<8x128xf32>
    %414 = arith.addf %412, %413 : vector<8x128xf32>
    %cst_170 = arith.constant dense<0.000000e+00> : vector<8xf32>
    %415 = vector.multi_reduction <add>, %414, %cst_170 [1] : vector<8x128xf32> to vector<8xf32>
    %416 = vector.shape_cast %415 : vector<8xf32> to vector<8x1xf32>
    %417 = arith.mulf %414, %414 : vector<8x128xf32>
    %cst_171 = arith.constant dense<0.000000e+00> : vector<8xf32>
    %418 = vector.multi_reduction <add>, %417, %cst_171 [1] : vector<8x128xf32> to vector<8xf32>
    %419 = vector.shape_cast %418 : vector<8xf32> to vector<8x1xf32>
    %cst_172 = arith.constant 3.125000e-02 : f32
    %420 = vector.broadcast %cst_172 : f32 to vector<8x1xf32>
    %421 = arith.mulf %416, %420 : vector<8x1xf32>
    %cst_173 = arith.constant 3.125000e-02 : f32
    %422 = vector.broadcast %cst_173 : f32 to vector<8x1xf32>
    %423 = arith.mulf %419, %422 : vector<8x1xf32>
    %424 = arith.mulf %421, %421 : vector<8x1xf32>
    %425 = arith.subf %423, %424 : vector<8x1xf32>
    %cst_174 = arith.constant 0.000000e+00 : f32
    %426 = vector.broadcast %cst_174 : f32 to vector<8x1xf32>
    %427 = arith.maximumf %425, %426 : vector<8x1xf32>
    %428 = vector.broadcast %421 : vector<8x1xf32> to vector<8x128xf32>
    %429 = arith.subf %414, %428 : vector<8x128xf32>
    %430 = vector.broadcast %cst_142 : f32 to vector<8x1xf32>
    %431 = arith.addf %427, %430 : vector<8x1xf32>
    %432 = math.rsqrt %431 : vector<8x1xf32>
    %433 = vector.broadcast %432 : vector<8x1xf32> to vector<8x128xf32>
    %434 = arith.mulf %429, %433 : vector<8x128xf32>
    %435 = arith.mulf %434, %333 : vector<8x128xf32>
    %436 = arith.addf %435, %337 : vector<8x128xf32>
    %cst_175 = arith.constant 0.000000e+00 : f32
    %cst_176 = arith.constant 6.000000e+00 : f32
    %437 = vector.broadcast %cst_175 : f32 to vector<8x128xf32>
    %438 = arith.maximumf %437, %436 : vector<8x128xf32>
    %439 = vector.broadcast %cst_176 : f32 to vector<8x128xf32>
    %440 = arith.minimumf %439, %438 : vector<8x128xf32>
    %441 = arith.index_cast %c2_i32_167 : i32 to index
    %c0_177 = arith.constant 0 : index
    %c0_178 = arith.constant 0 : index
    %442 = vector.load %arg9[%441, %c0_177, %c0_178] : memref<8x8x128xf32, #tpu.memory_space<vmem>>, vector<1x8x128xf32>
    %443 = vector.shape_cast %442 : vector<1x8x128xf32> to vector<8x128xf32>
    %444 = vector.shape_cast %440 : vector<8x128xf32> to vector<1x8x128xf32>
    tpu.vector_store %arg9[%441, %c0_177, %c0_178], %444 {strides = array<i32>} : memref<8x8x128xf32, #tpu.memory_space<vmem>>, vector<1x8x128xf32>,
    %c3_i32_179 = arith.constant 3 : i32
    %445 = arith.index_cast %c3_i32_179 : i32 to index
    %c0_180 = arith.constant 0 : index
    %c0_181 = arith.constant 0 : index
    %446 = vector.load %arg9[%445, %c0_180, %c0_181] : memref<8x8x128xf32, #tpu.memory_space<vmem>>, vector<1x8x128xf32>
    %447 = vector.shape_cast %446 : vector<1x8x128xf32> to vector<8x128xf32>
    %448 = arith.mulf %329, %440 : vector<8x128xf32>
    %449 = arith.addf %447, %448 : vector<8x128xf32>
    %cst_182 = arith.constant dense<0.000000e+00> : vector<8xf32>
    %450 = vector.multi_reduction <add>, %449, %cst_182 [1] : vector<8x128xf32> to vector<8xf32>
    %451 = vector.shape_cast %450 : vector<8xf32> to vector<8x1xf32>
    %452 = arith.mulf %449, %449 : vector<8x128xf32>
    %cst_183 = arith.constant dense<0.000000e+00> : vector<8xf32>
    %453 = vector.multi_reduction <add>, %452, %cst_183 [1] : vector<8x128xf32> to vector<8xf32>
    %454 = vector.shape_cast %453 : vector<8xf32> to vector<8x1xf32>
    %cst_184 = arith.constant 3.125000e-02 : f32
    %455 = vector.broadcast %cst_184 : f32 to vector<8x1xf32>
    %456 = arith.mulf %451, %455 : vector<8x1xf32>
    %cst_185 = arith.constant 3.125000e-02 : f32
    %457 = vector.broadcast %cst_185 : f32 to vector<8x1xf32>
    %458 = arith.mulf %454, %457 : vector<8x1xf32>
    %459 = arith.mulf %456, %456 : vector<8x1xf32>
    %460 = arith.subf %458, %459 : vector<8x1xf32>
    %cst_186 = arith.constant 0.000000e+00 : f32
    %461 = vector.broadcast %cst_186 : f32 to vector<8x1xf32>
    %462 = arith.maximumf %460, %461 : vector<8x1xf32>
    %463 = vector.broadcast %456 : vector<8x1xf32> to vector<8x128xf32>
    %464 = arith.subf %449, %463 : vector<8x128xf32>
    %465 = vector.broadcast %cst_142 : f32 to vector<8x1xf32>
    %466 = arith.addf %462, %465 : vector<8x1xf32>
    %467 = math.rsqrt %466 : vector<8x1xf32>
    %468 = vector.broadcast %467 : vector<8x1xf32> to vector<8x128xf32>
    %469 = arith.mulf %464, %468 : vector<8x128xf32>
    %470 = arith.mulf %469, %333 : vector<8x128xf32>
    %471 = arith.addf %470, %337 : vector<8x128xf32>
    %cst_187 = arith.constant 0.000000e+00 : f32
    %cst_188 = arith.constant 6.000000e+00 : f32
    %472 = vector.broadcast %cst_187 : f32 to vector<8x128xf32>
    %473 = arith.maximumf %472, %471 : vector<8x128xf32>
    %474 = vector.broadcast %cst_188 : f32 to vector<8x128xf32>
    %475 = arith.minimumf %474, %473 : vector<8x128xf32>
    %476 = arith.index_cast %c3_i32_179 : i32 to index
    %c0_189 = arith.constant 0 : index
    %c0_190 = arith.constant 0 : index
    %477 = vector.load %arg9[%476, %c0_189, %c0_190] : memref<8x8x128xf32, #tpu.memory_space<vmem>>, vector<1x8x128xf32>
    %478 = vector.shape_cast %477 : vector<1x8x128xf32> to vector<8x128xf32>
    %479 = vector.shape_cast %475 : vector<8x128xf32> to vector<1x8x128xf32>
    tpu.vector_store %arg9[%476, %c0_189, %c0_190], %479 {strides = array<i32>} : memref<8x8x128xf32, #tpu.memory_space<vmem>>, vector<1x8x128xf32>,
    %c4_i32_191 = arith.constant 4 : i32
    %480 = arith.index_cast %c4_i32_191 : i32 to index
    %c0_192 = arith.constant 0 : index
    %c0_193 = arith.constant 0 : index
    %481 = vector.load %arg9[%480, %c0_192, %c0_193] : memref<8x8x128xf32, #tpu.memory_space<vmem>>, vector<1x8x128xf32>
    %482 = vector.shape_cast %481 : vector<1x8x128xf32> to vector<8x128xf32>
    %483 = arith.mulf %329, %475 : vector<8x128xf32>
    %484 = arith.addf %482, %483 : vector<8x128xf32>
    %cst_194 = arith.constant dense<0.000000e+00> : vector<8xf32>
    %485 = vector.multi_reduction <add>, %484, %cst_194 [1] : vector<8x128xf32> to vector<8xf32>
    %486 = vector.shape_cast %485 : vector<8xf32> to vector<8x1xf32>
    %487 = arith.mulf %484, %484 : vector<8x128xf32>
    %cst_195 = arith.constant dense<0.000000e+00> : vector<8xf32>
    %488 = vector.multi_reduction <add>, %487, %cst_195 [1] : vector<8x128xf32> to vector<8xf32>
    %489 = vector.shape_cast %488 : vector<8xf32> to vector<8x1xf32>
    %cst_196 = arith.constant 3.125000e-02 : f32
    %490 = vector.broadcast %cst_196 : f32 to vector<8x1xf32>
    %491 = arith.mulf %486, %490 : vector<8x1xf32>
    %cst_197 = arith.constant 3.125000e-02 : f32
    %492 = vector.broadcast %cst_197 : f32 to vector<8x1xf32>
    %493 = arith.mulf %489, %492 : vector<8x1xf32>
    %494 = arith.mulf %491, %491 : vector<8x1xf32>
    %495 = arith.subf %493, %494 : vector<8x1xf32>
    %cst_198 = arith.constant 0.000000e+00 : f32
    %496 = vector.broadcast %cst_198 : f32 to vector<8x1xf32>
    %497 = arith.maximumf %495, %496 : vector<8x1xf32>
    %498 = vector.broadcast %491 : vector<8x1xf32> to vector<8x128xf32>
    %499 = arith.subf %484, %498 : vector<8x128xf32>
    %500 = vector.broadcast %cst_142 : f32 to vector<8x1xf32>
    %501 = arith.addf %497, %500 : vector<8x1xf32>
    %502 = math.rsqrt %501 : vector<8x1xf32>
    %503 = vector.broadcast %502 : vector<8x1xf32> to vector<8x128xf32>
    %504 = arith.mulf %499, %503 : vector<8x128xf32>
    %505 = arith.mulf %504, %333 : vector<8x128xf32>
    %506 = arith.addf %505, %337 : vector<8x128xf32>
    %cst_199 = arith.constant 0.000000e+00 : f32
    %cst_200 = arith.constant 6.000000e+00 : f32
    %507 = vector.broadcast %cst_199 : f32 to vector<8x128xf32>
    %508 = arith.maximumf %507, %506 : vector<8x128xf32>
    %509 = vector.broadcast %cst_200 : f32 to vector<8x128xf32>
    %510 = arith.minimumf %509, %508 : vector<8x128xf32>
    %511 = arith.index_cast %c4_i32_191 : i32 to index
    %c0_201 = arith.constant 0 : index
    %c0_202 = arith.constant 0 : index
    %512 = vector.load %arg9[%511, %c0_201, %c0_202] : memref<8x8x128xf32, #tpu.memory_space<vmem>>, vector<1x8x128xf32>
    %513 = vector.shape_cast %512 : vector<1x8x128xf32> to vector<8x128xf32>
    %514 = vector.shape_cast %510 : vector<8x128xf32> to vector<1x8x128xf32>
    tpu.vector_store %arg9[%511, %c0_201, %c0_202], %514 {strides = array<i32>} : memref<8x8x128xf32, #tpu.memory_space<vmem>>, vector<1x8x128xf32>,
    %c5_i32_203 = arith.constant 5 : i32
    %515 = arith.index_cast %c5_i32_203 : i32 to index
    %c0_204 = arith.constant 0 : index
    %c0_205 = arith.constant 0 : index
    %516 = vector.load %arg9[%515, %c0_204, %c0_205] : memref<8x8x128xf32, #tpu.memory_space<vmem>>, vector<1x8x128xf32>
    %517 = vector.shape_cast %516 : vector<1x8x128xf32> to vector<8x128xf32>
    %518 = arith.mulf %329, %510 : vector<8x128xf32>
    %519 = arith.addf %517, %518 : vector<8x128xf32>
    %cst_206 = arith.constant dense<0.000000e+00> : vector<8xf32>
    %520 = vector.multi_reduction <add>, %519, %cst_206 [1] : vector<8x128xf32> to vector<8xf32>
    %521 = vector.shape_cast %520 : vector<8xf32> to vector<8x1xf32>
    %522 = arith.mulf %519, %519 : vector<8x128xf32>
    %cst_207 = arith.constant dense<0.000000e+00> : vector<8xf32>
    %523 = vector.multi_reduction <add>, %522, %cst_207 [1] : vector<8x128xf32> to vector<8xf32>
    %524 = vector.shape_cast %523 : vector<8xf32> to vector<8x1xf32>
    %cst_208 = arith.constant 3.125000e-02 : f32
    %525 = vector.broadcast %cst_208 : f32 to vector<8x1xf32>
    %526 = arith.mulf %521, %525 : vector<8x1xf32>
    %cst_209 = arith.constant 3.125000e-02 : f32
    %527 = vector.broadcast %cst_209 : f32 to vector<8x1xf32>
    %528 = arith.mulf %524, %527 : vector<8x1xf32>
    %529 = arith.mulf %526, %526 : vector<8x1xf32>
    %530 = arith.subf %528, %529 : vector<8x1xf32>
    %cst_210 = arith.constant 0.000000e+00 : f32
    %531 = vector.broadcast %cst_210 : f32 to vector<8x1xf32>
    %532 = arith.maximumf %530, %531 : vector<8x1xf32>
    %533 = vector.broadcast %526 : vector<8x1xf32> to vector<8x128xf32>
    %534 = arith.subf %519, %533 : vector<8x128xf32>
    %535 = vector.broadcast %cst_142 : f32 to vector<8x1xf32>
    %536 = arith.addf %532, %535 : vector<8x1xf32>
    %537 = math.rsqrt %536 : vector<8x1xf32>
    %538 = vector.broadcast %537 : vector<8x1xf32> to vector<8x128xf32>
    %539 = arith.mulf %534, %538 : vector<8x128xf32>
    %540 = arith.mulf %539, %333 : vector<8x128xf32>
    %541 = arith.addf %540, %337 : vector<8x128xf32>
    %cst_211 = arith.constant 0.000000e+00 : f32
    %cst_212 = arith.constant 6.000000e+00 : f32
    %542 = vector.broadcast %cst_211 : f32 to vector<8x128xf32>
    %543 = arith.maximumf %542, %541 : vector<8x128xf32>
    %544 = vector.broadcast %cst_212 : f32 to vector<8x128xf32>
    %545 = arith.minimumf %544, %543 : vector<8x128xf32>
    %546 = arith.index_cast %c5_i32_203 : i32 to index
    %c0_213 = arith.constant 0 : index
    %c0_214 = arith.constant 0 : index
    %547 = vector.load %arg9[%546, %c0_213, %c0_214] : memref<8x8x128xf32, #tpu.memory_space<vmem>>, vector<1x8x128xf32>
    %548 = vector.shape_cast %547 : vector<1x8x128xf32> to vector<8x128xf32>
    %549 = vector.shape_cast %545 : vector<8x128xf32> to vector<1x8x128xf32>
    tpu.vector_store %arg9[%546, %c0_213, %c0_214], %549 {strides = array<i32>} : memref<8x8x128xf32, #tpu.memory_space<vmem>>, vector<1x8x128xf32>,
    %c6_i32_215 = arith.constant 6 : i32
    %550 = arith.index_cast %c6_i32_215 : i32 to index
    %c0_216 = arith.constant 0 : index
    %c0_217 = arith.constant 0 : index
    %551 = vector.load %arg9[%550, %c0_216, %c0_217] : memref<8x8x128xf32, #tpu.memory_space<vmem>>, vector<1x8x128xf32>
    %552 = vector.shape_cast %551 : vector<1x8x128xf32> to vector<8x128xf32>
    %553 = arith.mulf %329, %545 : vector<8x128xf32>
    %554 = arith.addf %552, %553 : vector<8x128xf32>
    %cst_218 = arith.constant dense<0.000000e+00> : vector<8xf32>
    %555 = vector.multi_reduction <add>, %554, %cst_218 [1] : vector<8x128xf32> to vector<8xf32>
    %556 = vector.shape_cast %555 : vector<8xf32> to vector<8x1xf32>
    %557 = arith.mulf %554, %554 : vector<8x128xf32>
    %cst_219 = arith.constant dense<0.000000e+00> : vector<8xf32>
    %558 = vector.multi_reduction <add>, %557, %cst_219 [1] : vector<8x128xf32> to vector<8xf32>
    %559 = vector.shape_cast %558 : vector<8xf32> to vector<8x1xf32>
    %cst_220 = arith.constant 3.125000e-02 : f32
    %560 = vector.broadcast %cst_220 : f32 to vector<8x1xf32>
    %561 = arith.mulf %556, %560 : vector<8x1xf32>
    %cst_221 = arith.constant 3.125000e-02 : f32
    %562 = vector.broadcast %cst_221 : f32 to vector<8x1xf32>
    %563 = arith.mulf %559, %562 : vector<8x1xf32>
    %564 = arith.mulf %561, %561 : vector<8x1xf32>
    %565 = arith.subf %563, %564 : vector<8x1xf32>
    %cst_222 = arith.constant 0.000000e+00 : f32
    %566 = vector.broadcast %cst_222 : f32 to vector<8x1xf32>
    %567 = arith.maximumf %565, %566 : vector<8x1xf32>
    %568 = vector.broadcast %561 : vector<8x1xf32> to vector<8x128xf32>
    %569 = arith.subf %554, %568 : vector<8x128xf32>
    %570 = vector.broadcast %cst_142 : f32 to vector<8x1xf32>
    %571 = arith.addf %567, %570 : vector<8x1xf32>
    %572 = math.rsqrt %571 : vector<8x1xf32>
    %573 = vector.broadcast %572 : vector<8x1xf32> to vector<8x128xf32>
    %574 = arith.mulf %569, %573 : vector<8x128xf32>
    %575 = arith.mulf %574, %333 : vector<8x128xf32>
    %576 = arith.addf %575, %337 : vector<8x128xf32>
    %cst_223 = arith.constant 0.000000e+00 : f32
    %cst_224 = arith.constant 6.000000e+00 : f32
    %577 = vector.broadcast %cst_223 : f32 to vector<8x128xf32>
    %578 = arith.maximumf %577, %576 : vector<8x128xf32>
    %579 = vector.broadcast %cst_224 : f32 to vector<8x128xf32>
    %580 = arith.minimumf %579, %578 : vector<8x128xf32>
    %581 = arith.index_cast %c6_i32_215 : i32 to index
    %c0_225 = arith.constant 0 : index
    %c0_226 = arith.constant 0 : index
    %582 = vector.load %arg9[%581, %c0_225, %c0_226] : memref<8x8x128xf32, #tpu.memory_space<vmem>>, vector<1x8x128xf32>
    %583 = vector.shape_cast %582 : vector<1x8x128xf32> to vector<8x128xf32>
    %584 = vector.shape_cast %580 : vector<8x128xf32> to vector<1x8x128xf32>
    tpu.vector_store %arg9[%581, %c0_225, %c0_226], %584 {strides = array<i32>} : memref<8x8x128xf32, #tpu.memory_space<vmem>>, vector<1x8x128xf32>,
    %c7_i32_227 = arith.constant 7 : i32
    %585 = arith.index_cast %c7_i32_227 : i32 to index
    %c0_228 = arith.constant 0 : index
    %c0_229 = arith.constant 0 : index
    %586 = vector.load %arg9[%585, %c0_228, %c0_229] : memref<8x8x128xf32, #tpu.memory_space<vmem>>, vector<1x8x128xf32>
    %587 = vector.shape_cast %586 : vector<1x8x128xf32> to vector<8x128xf32>
    %588 = arith.mulf %329, %580 : vector<8x128xf32>
    %589 = arith.addf %587, %588 : vector<8x128xf32>
    %cst_230 = arith.constant dense<0.000000e+00> : vector<8xf32>
    %590 = vector.multi_reduction <add>, %589, %cst_230 [1] : vector<8x128xf32> to vector<8xf32>
    %591 = vector.shape_cast %590 : vector<8xf32> to vector<8x1xf32>
    %592 = arith.mulf %589, %589 : vector<8x128xf32>
    %cst_231 = arith.constant dense<0.000000e+00> : vector<8xf32>
    %593 = vector.multi_reduction <add>, %592, %cst_231 [1] : vector<8x128xf32> to vector<8xf32>
    %594 = vector.shape_cast %593 : vector<8xf32> to vector<8x1xf32>
    %cst_232 = arith.constant 3.125000e-02 : f32
    %595 = vector.broadcast %cst_232 : f32 to vector<8x1xf32>
    %596 = arith.mulf %591, %595 : vector<8x1xf32>
    %cst_233 = arith.constant 3.125000e-02 : f32
    %597 = vector.broadcast %cst_233 : f32 to vector<8x1xf32>
    %598 = arith.mulf %594, %597 : vector<8x1xf32>
    %599 = arith.mulf %596, %596 : vector<8x1xf32>
    %600 = arith.subf %598, %599 : vector<8x1xf32>
    %cst_234 = arith.constant 0.000000e+00 : f32
    %601 = vector.broadcast %cst_234 : f32 to vector<8x1xf32>
    %602 = arith.maximumf %600, %601 : vector<8x1xf32>
    %603 = vector.broadcast %596 : vector<8x1xf32> to vector<8x128xf32>
    %604 = arith.subf %589, %603 : vector<8x128xf32>
    %605 = vector.broadcast %cst_142 : f32 to vector<8x1xf32>
    %606 = arith.addf %602, %605 : vector<8x1xf32>
    %607 = math.rsqrt %606 : vector<8x1xf32>
    %608 = vector.broadcast %607 : vector<8x1xf32> to vector<8x128xf32>
    %609 = arith.mulf %604, %608 : vector<8x128xf32>
    %610 = arith.mulf %609, %333 : vector<8x128xf32>
    %611 = arith.addf %610, %337 : vector<8x128xf32>
    %cst_235 = arith.constant 0.000000e+00 : f32
    %cst_236 = arith.constant 6.000000e+00 : f32
    %612 = vector.broadcast %cst_235 : f32 to vector<8x128xf32>
    %613 = arith.maximumf %612, %611 : vector<8x128xf32>
    %614 = vector.broadcast %cst_236 : f32 to vector<8x128xf32>
    %615 = arith.minimumf %614, %613 : vector<8x128xf32>
    %616 = arith.index_cast %c7_i32_227 : i32 to index
    %c0_237 = arith.constant 0 : index
    %c0_238 = arith.constant 0 : index
    %617 = vector.load %arg9[%616, %c0_237, %c0_238] : memref<8x8x128xf32, #tpu.memory_space<vmem>>, vector<1x8x128xf32>
    %618 = vector.shape_cast %617 : vector<1x8x128xf32> to vector<8x128xf32>
    %619 = vector.shape_cast %615 : vector<8x128xf32> to vector<1x8x128xf32>
    tpu.vector_store %arg9[%616, %c0_237, %c0_238], %619 {strides = array<i32>} : memref<8x8x128xf32, #tpu.memory_space<vmem>>, vector<1x8x128xf32>,
    %c8_i32_239 = arith.constant 8 : i32
    %c1_240 = arith.constant 1 : index
    %c0_241 = arith.constant 0 : index
    %c0_242 = arith.constant 0 : index
    %620 = vector.load %arg11[%c1_240, %c0_241, %c0_242] : memref<2x8x128xf32, #tpu.memory_space<vmem>>, vector<1x8x128xf32>
    %621 = vector.shape_cast %620 : vector<1x8x128xf32> to vector<8x128xf32>
    %622 = vector.shape_cast %615 : vector<8x128xf32> to vector<1x8x128xf32>
    tpu.vector_store %arg11[%c1_240, %c0_241, %c0_242], %622 {strides = array<i32>} : memref<2x8x128xf32, #tpu.memory_space<vmem>>, vector<1x8x128xf32>,
    %c0_i32_243 = arith.constant 0 : i32
    %623 = arith.cmpi eq, %arg1, %c0_i32_243 : i32
    %624 = arith.extui %623 : i1 to i32
    %c0_i32_244 = arith.constant 0 : i32
    %625 = arith.cmpi ne, %624, %c0_i32_244 : i32
    scf.if %625 {
      %c7 = arith.constant 7 : index
      %c0_245 = arith.constant 0 : index
      %c0_246 = arith.constant 0 : index
      %626 = vector.load %arg9[%c7, %c0_245, %c0_246] : memref<8x8x128xf32, #tpu.memory_space<vmem>>, vector<1x8x128xf32>
      %627 = vector.shape_cast %626 : vector<1x8x128xf32> to vector<8x128xf32>
      %c1_247 = arith.constant 1 : index
      %c0_248 = arith.constant 0 : index
      %c0_249 = arith.constant 0 : index
      %628 = vector.load %arg10[%c1_247, %c0_248, %c0_249] : memref<2x8x128xf32, #tpu.memory_space<vmem>>, vector<1x8x128xf32>
      %629 = vector.shape_cast %628 : vector<1x8x128xf32> to vector<8x128xf32>
      %630 = vector.shape_cast %627 : vector<8x128xf32> to vector<1x8x128xf32>
      tpu.vector_store %arg10[%c1_247, %c0_248, %c0_249], %630 {strides = array<i32>} : memref<2x8x128xf32, #tpu.memory_space<vmem>>, vector<1x8x128xf32>,
    } else {
    }
    return
  }
  func.func @transform_0(%arg0: i32, %arg1: i32) -> (i32, i32, i32) {
    %c0_i32 = arith.constant 0 : i32
    %c0_i32_0 = arith.constant 0 : i32
    return %arg1, %arg0, %c0_i32 : i32, i32, i32
  }
  func.func @transform_1(%arg0: i32, %arg1: i32) -> (i32, i32) {
    %c0_i32 = arith.constant 0 : i32
    %c0_i32_0 = arith.constant 0 : i32
    %c0_i32_1 = arith.constant 0 : i32
    return %c0_i32, %c0_i32_0 : i32, i32
  }
  func.func @transform_2(%arg0: i32, %arg1: i32) -> (i32, i32, i32) {
    %c0_i32 = arith.constant 0 : i32
    %c0_i32_0 = arith.constant 0 : i32
    %c0_i32_1 = arith.constant 0 : i32
    %c0_i32_2 = arith.constant 0 : i32
    return %c0_i32, %c0_i32_0, %c0_i32_1 : i32, i32, i32
  }
  func.func @transform_3(%arg0: i32, %arg1: i32) -> (i32, i32, i32) {
    %c0_i32 = arith.constant 0 : i32
    %c0_i32_0 = arith.constant 0 : i32
    %c0_i32_1 = arith.constant 0 : i32
    %c0_i32_2 = arith.constant 0 : i32
    return %c0_i32, %c0_i32_0, %c0_i32_1 : i32, i32, i32
  }
  func.func @transform_4(%arg0: i32, %arg1: i32) -> (i32, i32, i32) {
    %c0_i32 = arith.constant 0 : i32
    %c0_i32_0 = arith.constant 0 : i32
    %c0_i32_1 = arith.constant 0 : i32
    %c0_i32_2 = arith.constant 0 : i32
    return %c0_i32, %c0_i32_0, %c0_i32_1 : i32, i32, i32
  }
  func.func @transform_5(%arg0: i32, %arg1: i32) -> (i32, i32, i32) {
    %c0_i32 = arith.constant 0 : i32
    %c0_i32_0 = arith.constant 0 : i32
    %c0_i32_1 = arith.constant 0 : i32
    %c0_i32_2 = arith.constant 0 : i32
    return %c0_i32, %c0_i32_0, %c0_i32_1 : i32, i32, i32
  }
  func.func @transform_6(%arg0: i32, %arg1: i32) -> (i32, i32, i32) {
    %c0_i32 = arith.constant 0 : i32
    %c0_i32_0 = arith.constant 0 : i32
    %c0_i32_1 = arith.constant 0 : i32
    %c0_i32_2 = arith.constant 0 : i32
    return %c0_i32, %c0_i32_0, %c0_i32_1 : i32, i32, i32
  }
  func.func @transform_7(%arg0: i32, %arg1: i32) -> (i32, i32, i32) {
    %c0_i32 = arith.constant 0 : i32
    %c0_i32_0 = arith.constant 0 : i32
    return %arg1, %arg0, %c0_i32 : i32, i32, i32
  }
  func.func @transform_8(%arg0: i32, %arg1: i32) -> (i32, i32, i32) {
    %c0_i32 = arith.constant 0 : i32
    %c0_i32_0 = arith.constant 0 : i32
    %c0_i32_1 = arith.constant 0 : i32
    return %c0_i32, %arg0, %c0_i32_0 : i32, i32, i32
  }
}

</mosaic_0001>

<bundles_post_ra>
// kernel: tpu_custom_call.1
= control target key start
LH: loop header
LB: loop body
LE: loop exit
PB: predicated region body
PF: predicated region fallthrough
CT: control target
= control target key end

     0   :  { %14 = vsyncpa [#allocation5], 0  ;;  %s1465_s0 = inlined_call_operand.hbm [shape: f32[8,8,128], index: 0, kind: input, shape index: {}]   ;;  %s1466_s1 = inlined_call_operand.hbm [shape: f32[128,128], index: 1, kind: input, shape index: {}]   ;;  %s1467_s2 = inlined_call_operand.hbm [shape: f32[1,128,128], index: 2, kind: input, shape index: {}]   ;;  %s1468_s3 = inlined_call_operand.vmem [shape: f32[2,1,128], index: 3, kind: input, shape index: {}]   ;;  %s1469_s4 = inlined_call_operand.vmem [shape: f32[2,1,128], index: 4, kind: input, shape index: {}]   ;;  %s1470_s5 = inlined_call_operand.vmem [shape: f32[2,1,128], index: 5, kind: input, shape index: {}]   ;;  %s1471_s6 = inlined_call_operand.vmem [shape: f32[2,1,128], index: 6, kind: input, shape index: {}]   ;;  %s1472_s7 = inlined_call_operand.hbm [shape: f32[8,8,128], index: 7, kind: output, shape index: {0}]   ;;  %s1473_s8 = inlined_call_operand.hbm [shape: f32[2,8,128], index: 8, kind: output, shape index: {1}]  }
   0x1   :  { %15 = vsyncpa [#allocation8], 0 }
   0x2   :  { %16 = vsyncpa [#allocation6], 0 }
   0x3   :  { %17 = vsyncpa [#allocation12], 0  ;;  %s1212_s27 = smov [#allocation7]   ;;  %s1213_s29 = smov [#allocation4]  }
   0x4   :  { %s35_s28 = sshll.u32 %s1212_s27, 4  ;;  %s23_s30 = sshll.u32 %s1213_s29, 4  ;;  %s36_s28 = int_to_ptr.vmem [resolvable:$true] %s35_s28  ;;  %s1264_s30 = int_to_ptr.vmem [resolvable:$true] %s23_s30 }
   0x5   :  { %s1094_s11 = scalar_lea.hbm %s1466_s1, 2048 }
   0x6   :  { %p1095_p0 = scmp.ne.s32.totalorder %s1466_s1, %s1094_s11  ;;  %p1098_p1 = scmp.lt.u32.totalorder %s1094_s11, %s1466_s1 }
   0x8   :  { %p1100_p2 = pnand %p1098_p1, %p1095_p0 }
   0xa   :  { %1103 = shalt.err (!%p1100_p2)
}
   0xb   :  { %s1104_s16 = scalar_lea.vmem %s36_s28, 2048  ;;  %p1109_p4 = scmp.lt.s32.totalorder %s36_s28, %s36_s28 }
   0xc   :  { %p1105_p3 = scmp.ne.s32.totalorder %s36_s28, %s1104_s16  ;;  %p1110_p5 = scmp.lt.s32.totalorder %s1104_s16, %s1104_s16 }
   0xe   :  { %p1111_p6 = por %p1110_p5, %p1109_p4 }
  0x10   :  { %p1112_p7 = pnand %p1111_p6, %p1105_p3 }
  0x12   :  { %1115 = shalt.err (!%p1112_p7)
}
  0x13   :  { %s1214_s17 = smov 128   ;;  %s1215_s18 = smov 8  }
  0x14   :  { %41 = dma.hbm_to_vmem [thread:$0]  %s1466_s1, 2048, %s36_s28, [#allocation8], %s1214_s17, %s1214_s17, %s1215_s18  }
  0x15   :  { %s1116_s23 = scalar_lea.hbm %s1465_s0, 1024 }
  0x16   :  { %p1117_p8 = scmp.ne.s32.totalorder %s1465_s0, %s1116_s23  ;;  %p1120_p9 = scmp.lt.u32.totalorder %s1116_s23, %s1465_s0 }
  0x18   :  { %p1122_p10 = pnand %p1120_p9, %p1117_p8 }
  0x1a   :  { %1125 = shalt.err (!%p1122_p10)
}
  0x1b   :  { %s1126_s29 = scalar_lea.vmem %s1264_s30, 1024  ;;  %p1131_p12 = scmp.lt.s32.totalorder %s1264_s30, %s1264_s30 }
  0x1c   :  { %p1127_p11 = scmp.ne.s32.totalorder %s1264_s30, %s1126_s29  ;;  %p1132_p13 = scmp.lt.s32.totalorder %s1126_s29, %s1126_s29 }
  0x1e   :  { %p1133_p0 = por %p1132_p13, %p1131_p12 }
  0x20   :  { %p1134_p1 = pnand %p1133_p0, %p1127_p11 }
  0x22   :  { %1137 = shalt.err (!%p1134_p1)
}
  0x23   :  { %29 = dma.hbm_to_vmem [thread:$0]  %s1465_s0, 1024, %s1264_s30, [#allocation5], %s1214_s17, %s1214_s17, %s1215_s18  }
  0x24   :  { %s1216_s9 = smov [#allocation9]   ;;  %s1138_s13 = scalar_lea.hbm %s1467_s2, 2048 }
  0x25   :  { %s47_s10 = sshll.u32 %s1216_s9, 4  ;;  %p1139_p2 = scmp.ne.s32.totalorder %s1467_s2, %s1138_s13  ;;  %s48_s10 = int_to_ptr.vmem [resolvable:$true] %s47_s10 }
  0x26   :  { %p1142_p3 = scmp.lt.u32.totalorder %s1138_s13, %s1467_s2 }
  0x28   :  { %p1144_p4 = pnand %p1142_p3, %p1139_p2 }
  0x2a   :  { %1147 = shalt.err (!%p1144_p4)
}
  0x2b   :  { %s1148_s20 = scalar_lea.vmem %s48_s10, 2048  ;;  %p1153_p6 = scmp.lt.s32.totalorder %s48_s10, %s48_s10 }
  0x2c   :  { %p1149_p5 = scmp.ne.s32.totalorder %s48_s10, %s1148_s20  ;;  %p1154_p7 = scmp.lt.s32.totalorder %s1148_s20, %s1148_s20 }
  0x2e   :  { %p1155_p8 = por %p1154_p7, %p1153_p6 }
  0x30   :  { %p1156_p9 = pnand %p1155_p8, %p1149_p5 }
  0x32   :  { %1159 = shalt.err (!%p1156_p9)
}
  0x33   :  { %53 = dma.hbm_to_vmem [thread:$0]  %s1467_s2, 2048, %s48_s10, [#allocation8], %s1214_s17, %s1214_s17, %s1215_s18  }
  0x34   :  { %1204 = dma.done.wait [#allocation5], 1024  }
  0x35   :  { %1205 = vsyncadd [#allocation5], 4294966272 }
  0x36   :  { %1206 = dma.done.wait [#allocation8], 4096  }
  0x37   :  { %1207 = vsyncadd [#allocation8], 4294963200  ;;  %v77_v0 = vld [vmem:[#allocation7] sm:$0xff]  ;;  %v78_v1 = vld [vmem:[#allocation7 + $0x8] sm:$0xff] }
  0x38   :  { %v79_v2 = vld [vmem:[#allocation7 + $0x10] sm:$0xff]  ;;  %v991_v3 = vpack.c.bf16 %v78_v1, %v77_v0  ;;  %v80_v4 = vld [vmem:[#allocation7 + $0x18] sm:$0xff]  ;;  %v81_v6 = vld [vmem:[#allocation7 + $0x20] sm:$0xff] }
  0x39   :  { %v995_v5 = vpack.c.bf16 %v80_v4, %v79_v2  ;;  %v82_v7 = vld [vmem:[#allocation7 + $0x28] sm:$0xff]  ;;  %v93_v9 = vld [vmem:[#allocation4] sm:$0xff]  ;;  %v83_v10 = vld [vmem:[#allocation7 + $0x30] sm:$0xff] }
  0x3a   :  { %992 = vmatprep.subr.bf16.mxu0 %v991_v3  ;;  %v999_v8 = vpack.c.bf16 %v82_v7, %v81_v6  ;;  %v84_v11 = vld [vmem:[#allocation7 + $0x38] sm:$0xff]  ;;  %935 = vmatprep.mubr.f32.mxu0 %v93_v9  ;;  %v85_v13 = vld [vmem:[#allocation7 + $0x40] sm:$0xff]  ;;  %v86_v14 = vld [vmem:[#allocation7 + $0x48] sm:$0xff] }
  0x3b   :  { %994 = vmatpush3.bf16.msra.mxu0 %v991_v3  ;;  %v1003_v12 = vpack.c.bf16 %v84_v11, %v83_v10  ;;  %v1007_v15 = vpack.c.bf16 %v86_v14, %v85_v13  ;;  %v87_v16 = vld [vmem:[#allocation7 + $0x50] sm:$0xff]  ;;  %v88_v17 = vld [vmem:[#allocation7 + $0x58] sm:$0xff]  ;;  %v89_v19 = vld [vmem:[#allocation7 + $0x60] sm:$0xff] }
  0x3c   :  { %996 = vmatprep.subr.bf16.mxu0 %v995_v5  ;;  %v1011_v18 = vpack.c.bf16 %v88_v17, %v87_v16  ;;  %v90_v20 = vld [vmem:[#allocation7 + $0x68] sm:$0xff]  ;;  %v91_v22 = vld [vmem:[#allocation7 + $0x70] sm:$0xff]  ;;  %v92_v23 = vld [vmem:[#allocation7 + $0x78] sm:$0xff] }
  0x3d   :  { %v1015_v21 = vpack.c.bf16 %v90_v20, %v89_v19  ;;  %v1019_v24 = vpack.c.bf16 %v92_v23, %v91_v22  ;;  %v94_v25 = vld [vmem:[#allocation4 + $0x8] sm:$0xff]  ;;  %v95_v26 = vld [vmem:[#allocation4 + $0x10] sm:$0xff]  ;;  %v96_v27 = vld [vmem:[#allocation4 + $0x18] sm:$0xff] }
  0x3e   :  { %v1319_v28 = vld [vmem:[%s1469_s4] ss:$0 sm:$0xff]  ;;  %v441_v58 = vld [vmem:[#allocation9 + $0x8] sm:$0xff]  ;;  %v442_v60 = vld [vmem:[#allocation9 + $0x10] sm:$0xff] }
  0x3f   :  { %998 = vmatpush3.bf16.msra.mxu0 %v995_v5  ;;  %v1324_v29 = vld [vmem:[%s1468_s3] ss:$0 sm:$0xff]  ;;  %v252_v31 = vmul.f32 0.0, %v1319_v28  ;;  %v443_v61 = vld [vmem:[#allocation9 + $0x18] sm:$0xff]  ;;  %v445_v0 = vld [vmem:[#allocation9 + $0x28] sm:$0xff] }
  0x40   :  { %1000 = vmatprep.subr.bf16.mxu0 %v999_v8  ;;  %v1331_v46 = vld [vmem:[%s1470_s5] ss:$0 sm:$0xff]  ;;  %v1027_v62 = vpack.c.bf16 %v443_v61, %v442_v60  ;;  %v446_v2 = vld [vmem:[#allocation9 + $0x30] sm:$0xff]  ;;  %v447_v3 = vld [vmem:[#allocation9 + $0x38] sm:$0xff] }
  0x41   :  { %v1336_v48 = vld [vmem:[%s1471_s6] ss:$0 sm:$0xff]  ;;  %v1035_v4 = vpack.c.bf16 %v447_v3, %v446_v2  ;;  %v449_v6 = vld [vmem:[#allocation9 + $0x48] sm:$0xff]  ;;  %v450_v7 = vld [vmem:[#allocation9 + $0x50] sm:$0xff] }
  0x42   :  { %v440_v57 = vld [vmem:[#allocation9] sm:$0xff]  ;;  %v451_v10 = vld [vmem:[#allocation9 + $0x58] sm:$0xff]  ;;  %v453_v14 = vld [vmem:[#allocation9 + $0x68] sm:$0xff] }
  0x43   :  { %1002 = vmatpush3.bf16.msra.mxu0 %v999_v8  ;;  %v1023_v59 = vpack.c.bf16 %v441_v58, %v440_v57  ;;  %v444_v63 = vld [vmem:[#allocation9 + $0x20] sm:$0xff]  ;;  %v454_v16 = vld [vmem:[#allocation9 + $0x70] sm:$0xff]  ;;  %v455_v17 = vld [vmem:[#allocation9 + $0x78] sm:$0xff] }
  0x44   :  { %1004 = vmatprep.subr.bf16.mxu0 %v1003_v12  ;;  %v1031_v1 = vpack.c.bf16 %v445_v0, %v444_v63  ;;  %v448_v5 = vld [vmem:[#allocation9 + $0x40] sm:$0xff]  ;;  %v98_v20 = vld [vmem:[#allocation4 + $0x28] sm:$0xff]  ;;  %v99_v3 = vld [vmem:[#allocation4 + $0x30] sm:$0xff] }
  0x45   :  { %1024 = vmatprep.subr.bf16.mxu1 %v1023_v59  ;;  %v1039_v9 = vpack.c.bf16 %v449_v6, %v448_v5  ;;  %v452_v13 = vld [vmem:[#allocation9 + $0x60] sm:$0xff] }
  0x46   :  { %1026 = vmatpush3.bf16.msra.mxu1 %v1023_v59  ;;  %v97_v19 = vld [vmem:[#allocation4 + $0x20] sm:$0xff] }
  0x47   :  { %1006 = vmatpush3.bf16.msra.mxu0 %v1003_v12  ;;  %1028 = vmatprep.subr.bf16.mxu1 %v1027_v62  ;;  %v1043_v12 = vpack.c.bf16 %v451_v10, %v450_v7 }
  0x48   :  { %1008 = vmatprep.subr.bf16.mxu0 %v1007_v15 }
  0x4a   :  { %1030 = vmatpush3.bf16.msra.mxu1 %v1027_v62 }
  0x4b   :  { %1010 = vmatpush3.bf16.msra.mxu0 %v1007_v15  ;;  %1032 = vmatprep.subr.bf16.mxu1 %v1031_v1  ;;  %v1047_v15 = vpack.c.bf16 %v453_v14, %v452_v13 }
  0x4c   :  { %1012 = vmatprep.subr.bf16.mxu0 %v1011_v18 }
  0x4e   :  { %1034 = vmatpush3.bf16.msra.mxu1 %v1031_v1 }
  0x4f   :  { %1014 = vmatpush3.bf16.msra.mxu0 %v1011_v18  ;;  %1036 = vmatprep.subr.bf16.mxu1 %v1035_v4  ;;  %v1051_v18 = vpack.c.bf16 %v455_v17, %v454_v16 }
  0x50   :  { %1016 = vmatprep.subr.bf16.mxu0 %v1015_v21 }
  0x52   :  { %1038 = vmatpush3.bf16.msra.mxu1 %v1035_v4  ;;  %v100_v4 = vld [vmem:[#allocation4 + $0x38] sm:$0xff] }
  0x53   :  { %1018 = vmatpush3.bf16.msra.mxu0 %v1015_v21  ;;  %1040 = vmatprep.subr.bf16.mxu1 %v1039_v9 }
  0x54   :  { %1020 = vmatprep.subr.bf16.mxu0 %v1019_v24 }
  0x56   :  { %1042 = vmatpush3.bf16.msra.mxu1 %v1039_v9 }
  0x57   :  { %1022 = vmatpush3.bf16.msra.mxu0 %v1019_v24  ;;  %1044 = vmatprep.subr.bf16.mxu1 %v1043_v12 }
  0x5a   :  { %936 = vmatmul.mubr.f32.vlgmr.msra.gmra.mrb[0].mxu0 %v94_v25  ;;  %1046 = vmatpush3.bf16.msra.mxu1 %v1043_v12 }
  0x5b   :  { %938 = vmatprep.mubr.f32.mxu0 %v95_v26  ;;  %1048 = vmatprep.subr.bf16.mxu1 %v1047_v15 }
  0x5e   :  { %939 = vmatmul.mubr.f32.gmra.mrb[2].mxu0 %v96_v27  ;;  %1050 = vmatpush3.bf16.msra.mxu1 %v1047_v15 }
  0x5f   :  { %1052 = vmatprep.subr.bf16.mxu1 %v1051_v18  ;;  %941 = vmatprep.mubr.f32.mxu0 %v97_v19  ;;  %v1362_v19 = vld [vmem:[%s1468_s3 + $0x1] ss:$0 sm:$0xff] }
  0x62   :  { %1054 = vmatpush3.bf16.msra.mxu1 %v1051_v18  ;;  %942 = vmatmul.mubr.f32.gmra.mrb[4].mxu0 %v98_v20  ;;  %v1367_v20 = vld [vmem:[%s1469_s4 + $0x1] ss:$0 sm:$0xff] }
  0x63   :  { %944 = vmatprep.mubr.f32.mxu0 %v99_v3 }
  0x66   :  { %945 = vmatmul.mubr.f32.gmra.mrb[6].mxu0 %v100_v4 }
 0x12d   :  { %v937_v30 = vpop.f32.mrb[0].mxu0 }
 0x12e   :  { %v167_v32 = vpop.f32.mrb[1].mxu0  ;;  %v214_v53 = vadd.f32 %v937_v30, %v1324_v29 }
 0x12f   :  { %v213_v33 = vadd.f32 %v1324_v29, %v167_v32 }
 0x131   :  { %v253_v34 = vadd.f32 %v252_v31, %v213_v33  ;;  %v1342_v8 = vpop.f32.mrb[2].mxu0 }
 0x132   :  { %v177_v11 = vpop.f32.mrb[3].mxu0  ;;  %v216_v59 = vadd.f32 %v1342_v8, %v1324_v29 }
 0x133   :  { %254 = vadd.xlane.f32.xlu0 %v253_v34  ;;  %v256_v35 = vmul.f32 %v253_v34, %v253_v34 }
 0x135   :  { %v1353_v63 = vpop.f32.mrb[4].mxu0 }
 0x136   :  { %v187_v0 = vpop.f32.mrb[5].mxu0 }
 0x137   :  { %257 = vadd.xlane.f32.xlu0 %v256_v35 }
 0x1c0   :  { %v255_v36 = vpop.xlane.xlu0 %254 }
 0x1c1   :  { %v259_v37 = vmul.f32 0.03125, %v255_v36 }
 0x1c3   :  { %v261_v39 = vmul.f32 %v259_v37, %v259_v37  ;;  %v264_v44 = vsub.f32 %v253_v34, %v259_v37  ;;  %v215_v37 = vadd.f32 %v1324_v29, %v177_v11 }
 0x1c4   :  { %v258_v38 = vpop.xlane.xlu0 %257 }
 0x1c5   :  { %v260_v40 = vmul.f32 0.03125, %v258_v38 }
 0x1c7   :  { %v262_v41 = vsub.f32 %v260_v40, %v261_v39 }
 0x1c9   :  { %v263_v42 = vmax.f32 %v262_v41, 0.0 }
 0x1cb   :  { %v265_v43 = vadd.f32 1e-06, %v263_v42 }
 0x1cd   :  { %1062 = vrsqrt.f32 %v265_v43 }
 0x1d7   :  { %v1063_v45 = vpop.eup %1062 }
 0x1d8   :  { %v267_v47 = vmul.f32 %v1063_v45, %v264_v44 }
 0x1da   :  { %v268_v49 = vmul.f32 %v1331_v46, %v267_v47 }
 0x1dc   :  { %v269_v50 = vadd.f32 %v1336_v48, %v268_v49 }
 0x1de   :  { %v270_v51 = vmax.f32 %v269_v50, 0.0 }
 0x1e0   :  { %v271_v52 = vmin.f32 %v270_v51, 6.0 }
 0x1e2   :  { %v275_v54 = vmul.f32 %v1319_v28, %v271_v52  ;;  %979 = vmatprep.mubr.f32.mxu1 %v271_v52 }
 0x1e4   :  { %v276_v55 = vadd.f32 %v275_v54, %v214_v53 }
 0x1e6   :  { %277 = vadd.xlane.f32.xlu1 %v276_v55  ;;  %v279_v56 = vmul.f32 %v276_v55, %v276_v55 }
 0x1ea   :  { %280 = vadd.xlane.f32.xlu1 %v279_v56 }
 0x273   :  { %v278_v21 = vpop.xlane.xlu1 %277 }
 0x274   :  { %v282_v22 = vmul.f32 0.03125, %v278_v21  ;;  %v217_v21 = vadd.f32 %v1324_v29, %v187_v0 }
 0x276   :  { %v284_v24 = vmul.f32 %v282_v22, %v282_v22  ;;  %v287_v31 = vsub.f32 %v276_v55, %v282_v22 }
 0x277   :  { %v281_v23 = vpop.xlane.xlu1 %280 }
 0x278   :  { %v283_v25 = vmul.f32 0.03125, %v281_v23 }
 0x27a   :  { %v285_v26 = vsub.f32 %v283_v25, %v284_v24  ;;  %v620_v25 = vmul.f32 0.0, %v1367_v20 }
 0x27c   :  { %v286_v27 = vmax.f32 %v285_v26, 0.0 }
 0x27e   :  { %v288_v30 = vadd.f32 1e-06, %v286_v27 }
 0x280   :  { %1064 = vrsqrt.f32 %v288_v30 }
 0x28a   :  { %v1065_v32 = vpop.eup %1064 }
 0x28b   :  { %v290_v33 = vmul.f32 %v1065_v32, %v287_v31 }
 0x28d   :  { %v291_v34 = vmul.f32 %v1331_v46, %v290_v33 }
 0x28f   :  { %v292_v35 = vadd.f32 %v1336_v48, %v291_v34 }
 0x291   :  { %v293_v36 = vmax.f32 %v292_v35, 0.0 }
 0x293   :  { %v294_v38 = vmin.f32 %v293_v36, 6.0 }
 0x295   :  { %v298_v39 = vmul.f32 %v1319_v28, %v294_v38  ;;  %980 = vmatmul.mubr.f32.vlgmr.msra.gmra.mrb[0].mxu1 %v294_v38 }
 0x297   :  { %v299_v40 = vadd.f32 %v298_v39, %v215_v37 }
 0x299   :  { %300 = vadd.xlane.f32.xlu0 %v299_v40  ;;  %v302_v41 = vmul.f32 %v299_v40, %v299_v40 }
 0x29b   :  { %303 = vadd.xlane.f32.xlu1 %v302_v41 }
 0x326   :  { %v301_v42 = vpop.xlane.xlu0 %300 }
 0x327   :  { %v305_v43 = vmul.f32 0.03125, %v301_v42 }
 0x328   :  { %v304_v44 = vpop.xlane.xlu1 %303 }
 0x329   :  { %v307_v45 = vmul.f32 %v305_v43, %v305_v43  ;;  %v306_v47 = vmul.f32 0.03125, %v304_v44  ;;  %v310_v52 = vsub.f32 %v299_v40, %v305_v43 }
 0x32b   :  { %v308_v49 = vsub.f32 %v306_v47, %v307_v45 }
 0x32d   :  { %v309_v50 = vmax.f32 %v308_v49, 0.0 }
 0x32f   :  { %v311_v51 = vadd.f32 1e-06, %v309_v50 }
 0x331   :  { %1066 = vrsqrt.f32 %v311_v51 }
 0x33b   :  { %v1067_v53 = vpop.eup %1066 }
 0x33c   :  { %v313_v54 = vmul.f32 %v1067_v53, %v310_v52 }
 0x33e   :  { %v314_v55 = vmul.f32 %v1331_v46, %v313_v54 }
 0x340   :  { %v315_v56 = vadd.f32 %v1336_v48, %v314_v55 }
 0x342   :  { %v316_v57 = vmax.f32 %v315_v56, 0.0  ;;  %v1377_v56 = vld [vmem:[%s1470_s5 + $0x1] ss:$0 sm:$0xff]  ;;  %s1217_s5 = smov [#allocation10]  }
 0x344   :  { %v317_v58 = vmin.f32 %v316_v57, 6.0 }
 0x346   :  { %982 = vmatprep.mubr.f32.mxu1 %v317_v58  ;;  %v321_v60 = vmul.f32 %v1319_v28, %v317_v58 }
 0x348   :  { %v322_v61 = vadd.f32 %v321_v60, %v216_v59  ;;  %v1383_v59 = vld [vmem:[%s1471_s6 + $0x1] ss:$0 sm:$0xff]  ;;  %s814_s6 = sshll.u32 %s1217_s5, 4  ;;  %s815_s6 = int_to_ptr.vmem [resolvable:$true] %s814_s6 }
 0x349   :  { %s1160_s12 = scalar_lea.vmem %s815_s6, 1024  ;;  %p1165_p11 = scmp.lt.s32.totalorder %s815_s6, %s815_s6 }
 0x34a   :  { %323 = vadd.xlane.f32.xlu0 %v322_v61  ;;  %v325_v62 = vmul.f32 %v322_v61, %v322_v61  ;;  %p1161_p10 = scmp.ne.s32.totalorder %s815_s6, %s1160_s12  ;;  %p1166_p12 = scmp.lt.s32.totalorder %s1160_s12, %s1160_s12 }
 0x34c   :  { %326 = vadd.xlane.f32.xlu1 %v325_v62  ;;  %p1167_p13 = por %p1166_p12, %p1165_p11 }
 0x34e   :  { %p1168_p0 = pnand %p1167_p13, %p1161_p10 }
 0x368   :  { %v1355_v1 = vpop.f32.mrb[0].mxu1 }
 0x369   :  { %v530_v2 = vpop.f32.mrb[1].mxu1 }
 0x36a   :  { %v577_v23 = vadd.f32 %v1362_v19, %v530_v2  ;;  %v218_v2 = vadd.f32 %v1353_v63, %v1324_v29  ;;  %v1393_v63 = vpop.f32.mrb[6].mxu0 }
 0x36c   :  { %v621_v30 = vadd.f32 %v620_v25, %v577_v23 }
 0x36e   :  { %v624_v31 = vmul.f32 %v621_v30, %v621_v30 }
 0x3d7   :  { %v324_v5 = vpop.xlane.xlu0 %323 }
 0x3d8   :  { %v328_v6 = vmul.f32 0.03125, %v324_v5 }
 0x3d9   :  { %v327_v7 = vpop.xlane.xlu1 %326 }
 0x3da   :  { %v330_v8 = vmul.f32 %v328_v6, %v328_v6  ;;  %v329_v9 = vmul.f32 0.03125, %v327_v7  ;;  %v333_v13 = vsub.f32 %v322_v61, %v328_v6  ;;  %v578_v7 = vadd.f32 %v1355_v1, %v1362_v19 }
 0x3dc   :  { %v331_v10 = vsub.f32 %v329_v9, %v330_v8 }
 0x3de   :  { %v332_v11 = vmax.f32 %v331_v10, 0.0 }
 0x3e0   :  { %v334_v12 = vadd.f32 1e-06, %v332_v11 }
 0x3e2   :  { %1068 = vrsqrt.f32 %v334_v12  ;;  %v197_v12 = vpop.f32.mrb[7].mxu0 }
 0x3ec   :  { %v1069_v14 = vpop.eup %1068 }
 0x3ed   :  { %v336_v15 = vmul.f32 %v1069_v14, %v333_v13 }
 0x3ef   :  { %v337_v16 = vmul.f32 %v1331_v46, %v336_v15 }
 0x3f1   :  { %v338_v17 = vadd.f32 %v1336_v48, %v337_v16 }
 0x3f3   :  { %v339_v18 = vmax.f32 %v338_v17, 0.0 }
 0x3f5   :  { %v340_v22 = vmin.f32 %v339_v18, 6.0 }
 0x3f7   :  { %v344_v24 = vmul.f32 %v1319_v28, %v340_v22  ;;  %983 = vmatmul.mubr.f32.gmra.mrb[2].mxu1 %v340_v22 }
 0x3f9   :  { %v345_v26 = vadd.f32 %v344_v24, %v217_v21 }
 0x3fb   :  { %346 = vadd.xlane.f32.xlu0 %v345_v26  ;;  %v348_v27 = vmul.f32 %v345_v26, %v345_v26 }
 0x3fd   :  { %349 = vadd.xlane.f32.xlu1 %v348_v27 }
 0x3ff   :  { %622 = vadd.xlane.f32.xlu0 %v621_v30 }
 0x401   :  { %625 = vadd.xlane.f32.xlu1 %v624_v31 }
 0x488   :  { %v347_v32 = vpop.xlane.xlu0 %346 }
 0x489   :  { %v351_v33 = vmul.f32 0.03125, %v347_v32 }
 0x48a   :  { %v350_v34 = vpop.xlane.xlu1 %349 }
 0x48b   :  { %v353_v35 = vmul.f32 %v351_v33, %v351_v33  ;;  %v352_v36 = vmul.f32 0.03125, %v350_v34  ;;  %v356_v50 = vsub.f32 %v345_v26, %v351_v33 }
 0x48c   :  { %v623_v37 = vpop.xlane.xlu0 %622 }
 0x48d   :  { %v354_v38 = vsub.f32 %v352_v36, %v353_v35  ;;  %v627_v39 = vmul.f32 0.03125, %v623_v37 }
 0x48e   :  { %v626_v40 = vpop.xlane.xlu1 %625 }
 0x48f   :  { %v355_v41 = vmax.f32 %v354_v38, 0.0  ;;  %v629_v42 = vmul.f32 %v627_v39, %v627_v39  ;;  %v628_v43 = vmul.f32 0.03125, %v626_v40  ;;  %v632_v53 = vsub.f32 %v621_v30, %v627_v39 }
 0x491   :  { %v357_v44 = vadd.f32 1e-06, %v355_v41  ;;  %v630_v45 = vsub.f32 %v628_v43, %v629_v42 }
 0x493   :  { %1070 = vrsqrt.f32 %v357_v44  ;;  %v631_v47 = vmax.f32 %v630_v45, 0.0  ;;  %v219_v44 = vadd.f32 %v1324_v29, %v197_v12 }
 0x495   :  { %v633_v49 = vadd.f32 1e-06, %v631_v47 }
 0x497   :  { %1072 = vrsqrt.f32 %v633_v49 }
 0x49d   :  { %v1071_v51 = vpop.eup %1070 }
 0x49e   :  { %v359_v52 = vmul.f32 %v1071_v51, %v356_v50 }
 0x4a0   :  { %v360_v54 = vmul.f32 %v1331_v46, %v359_v52 }
 0x4a1   :  { %v1073_v55 = vpop.eup %1072 }
 0x4a2   :  { %v361_v57 = vadd.f32 %v1336_v48, %v360_v54  ;;  %v635_v58 = vmul.f32 %v1073_v55, %v632_v53 }
 0x4a4   :  { %v362_v60 = vmax.f32 %v361_v57, 0.0  ;;  %v636_v61 = vmul.f32 %v1377_v56, %v635_v58 }
 0x4a6   :  { %v363_v62 = vmin.f32 %v362_v60, 6.0  ;;  %v637_v0 = vadd.f32 %v1383_v59, %v636_v61 }
 0x4a8   :  { %985 = vmatprep.mubr.f32.mxu1 %v363_v62  ;;  %v367_v3 = vmul.f32 %v1319_v28, %v363_v62  ;;  %v638_v4 = vmax.f32 %v637_v0, 0.0 }
 0x4aa   :  { %v368_v5 = vadd.f32 %v367_v3, %v218_v2  ;;  %v639_v6 = vmin.f32 %v638_v4, 6.0 }
 0x4ac   :  { %369 = vadd.xlane.f32.xlu0 %v368_v5  ;;  %v371_v8 = vmul.f32 %v368_v5, %v368_v5  ;;  %v643_v9 = vmul.f32 %v1367_v20, %v639_v6  ;;  %640 = vst [vmem:[#allocation10] sm:$0xff] %v639_v6 }
 0x4ae   :  { %372 = vadd.xlane.f32.xlu1 %v371_v8  ;;  %v644_v10 = vadd.f32 %v643_v9, %v578_v7 }
 0x4b0   :  { %645 = vadd.xlane.f32.xlu0 %v644_v10  ;;  %v647_v11 = vmul.f32 %v644_v10, %v644_v10 }
 0x4b2   :  { %648 = vadd.xlane.f32.xlu1 %v647_v11 }
 0x4ca   :  { %v1395_v13 = vpop.f32.mrb[2].mxu1 }
 0x4cb   :  { %v540_v14 = vpop.f32.mrb[3].mxu1 }
 0x4cc   :  { %v579_v53 = vadd.f32 %v1362_v19, %v540_v14 }
 0x539   :  { %v370_v15 = vpop.xlane.xlu0 %369 }
 0x53a   :  { %v374_v16 = vmul.f32 0.03125, %v370_v15 }
 0x53b   :  { %v373_v17 = vpop.xlane.xlu1 %372 }
 0x53c   :  { %v376_v1 = vmul.f32 %v374_v16, %v374_v16  ;;  %v375_v18 = vmul.f32 0.03125, %v373_v17  ;;  %v379_v34 = vsub.f32 %v368_v5, %v374_v16 }
 0x53d   :  { %v646_v21 = vpop.xlane.xlu0 %645 }
 0x53e   :  { %v377_v22 = vsub.f32 %v375_v18, %v376_v1  ;;  %v650_v23 = vmul.f32 0.03125, %v646_v21 }
 0x53f   :  { %v649_v24 = vpop.xlane.xlu1 %648 }
 0x540   :  { %v378_v25 = vmax.f32 %v377_v22, 0.0  ;;  %v652_v26 = vmul.f32 %v650_v23, %v650_v23  ;;  %v651_v27 = vmul.f32 0.03125, %v649_v24  ;;  %v655_v37 = vsub.f32 %v644_v10, %v650_v23 }
 0x542   :  { %v380_v30 = vadd.f32 1e-06, %v378_v25  ;;  %v653_v31 = vsub.f32 %v651_v27, %v652_v26 }
 0x544   :  { %1074 = vrsqrt.f32 %v380_v30  ;;  %v654_v32 = vmax.f32 %v653_v31, 0.0  ;;  %v220_v30 = vadd.f32 %v1393_v63, %v1324_v29 }
 0x546   :  { %v656_v33 = vadd.f32 1e-06, %v654_v32 }
 0x548   :  { %1076 = vrsqrt.f32 %v656_v33 }
 0x54e   :  { %v1075_v35 = vpop.eup %1074 }
 0x54f   :  { %v382_v36 = vmul.f32 %v1075_v35, %v379_v34  ;;  %v580_v35 = vadd.f32 %v1395_v13, %v1362_v19 }
 0x551   :  { %v383_v38 = vmul.f32 %v1331_v46, %v382_v36 }
 0x552   :  { %v1077_v39 = vpop.eup %1076 }
 0x553   :  { %v384_v40 = vadd.f32 %v1336_v48, %v383_v38  ;;  %v658_v41 = vmul.f32 %v1077_v39, %v655_v37 }
 0x555   :  { %v385_v42 = vmax.f32 %v384_v40, 0.0  ;;  %v659_v43 = vmul.f32 %v1377_v56, %v658_v41 }
 0x557   :  { %v386_v45 = vmin.f32 %v385_v42, 6.0  ;;  %v660_v47 = vadd.f32 %v1383_v59, %v659_v43 }
 0x559   :  { %v390_v49 = vmul.f32 %v1319_v28, %v386_v45  ;;  %986 = vmatmul.mubr.f32.gmra.mrb[4].mxu1 %v386_v45  ;;  %v661_v50 = vmax.f32 %v660_v47, 0.0 }
 0x55b   :  { %v391_v51 = vadd.f32 %v390_v49, %v219_v44  ;;  %v662_v52 = vmin.f32 %v661_v50, 6.0 }
 0x55d   :  { %392 = vadd.xlane.f32.xlu0 %v391_v51  ;;  %v394_v54 = vmul.f32 %v391_v51, %v391_v51  ;;  %663 = vst [vmem:[#allocation10 + $0x8] sm:$0xff] %v662_v52  ;;  %v666_v55 = vmul.f32 %v1367_v20, %v662_v52 }
 0x55f   :  { %395 = vadd.xlane.f32.xlu1 %v394_v54  ;;  %v667_v57 = vadd.f32 %v666_v55, %v579_v53 }
 0x561   :  { %668 = vadd.xlane.f32.xlu0 %v667_v57  ;;  %v670_v58 = vmul.f32 %v667_v57, %v667_v57 }
 0x563   :  { %671 = vadd.xlane.f32.xlu1 %v670_v58 }
 0x5ea   :  { %v393_v60 = vpop.xlane.xlu0 %392 }
 0x5eb   :  { %v397_v61 = vmul.f32 0.03125, %v393_v60 }
 0x5ec   :  { %v396_v62 = vpop.xlane.xlu1 %395 }
 0x5ed   :  { %v399_v0 = vmul.f32 %v397_v61, %v397_v61  ;;  %v398_v2 = vmul.f32 0.03125, %v396_v62  ;;  %v402_v15 = vsub.f32 %v391_v51, %v397_v61 }
 0x5ee   :  { %v669_v3 = vpop.xlane.xlu0 %668 }
 0x5ef   :  { %v400_v4 = vsub.f32 %v398_v2, %v399_v0  ;;  %v673_v5 = vmul.f32 0.03125, %v669_v3 }
 0x5f0   :  { %v672_v6 = vpop.xlane.xlu1 %671 }
 0x5f1   :  { %v401_v7 = vmax.f32 %v400_v4, 0.0  ;;  %v675_v8 = vmul.f32 %v673_v5, %v673_v5  ;;  %v674_v9 = vmul.f32 0.03125, %v672_v6  ;;  %v678_v1 = vsub.f32 %v667_v57, %v673_v5 }
 0x5f3   :  { %v403_v10 = vadd.f32 1e-06, %v401_v7  ;;  %v676_v11 = vsub.f32 %v674_v9, %v675_v8 }
 0x5f5   :  { %1078 = vrsqrt.f32 %v403_v10  ;;  %v677_v12 = vmax.f32 %v676_v11, 0.0 }
 0x5f7   :  { %v679_v14 = vadd.f32 1e-06, %v677_v12 }
 0x5f9   :  { %1080 = vrsqrt.f32 %v679_v14 }
 0x5ff   :  { %v1079_v16 = vpop.eup %1078 }
 0x600   :  { %v405_v17 = vmul.f32 %v1079_v16, %v402_v15 }
 0x602   :  { %v406_v18 = vmul.f32 %v1331_v46, %v405_v17 }
 0x603   :  { %v1081_v21 = vpop.eup %1080 }
 0x604   :  { %v407_v22 = vadd.f32 %v1336_v48, %v406_v18  ;;  %v681_v23 = vmul.f32 %v1081_v21, %v678_v1 }
 0x606   :  { %v408_v24 = vmax.f32 %v407_v22, 0.0  ;;  %v682_v25 = vmul.f32 %v1377_v56, %v681_v23 }
 0x608   :  { %v409_v26 = vmin.f32 %v408_v24, 6.0  ;;  %v683_v27 = vadd.f32 %v1383_v59, %v682_v25 }
 0x60a   :  { %988 = vmatprep.mubr.f32.mxu1 %v409_v26  ;;  %v413_v31 = vmul.f32 %v1319_v28, %v409_v26  ;;  %v684_v32 = vmax.f32 %v683_v27, 0.0 }
 0x60c   :  { %v414_v33 = vadd.f32 %v413_v31, %v220_v30  ;;  %v685_v34 = vmin.f32 %v684_v32, 6.0 }
 0x60e   :  { %415 = vadd.xlane.f32.xlu0 %v414_v33  ;;  %v417_v36 = vmul.f32 %v414_v33, %v414_v33  ;;  %v689_v37 = vmul.f32 %v1367_v20, %v685_v34  ;;  %686 = vst [vmem:[#allocation10 + $0x10] sm:$0xff] %v685_v34 }
 0x610   :  { %418 = vadd.xlane.f32.xlu1 %v417_v36  ;;  %v690_v38 = vadd.f32 %v689_v37, %v580_v35 }
 0x612   :  { %691 = vadd.xlane.f32.xlu0 %v690_v38  ;;  %v693_v39 = vmul.f32 %v690_v38, %v690_v38 }
 0x614   :  { %694 = vadd.xlane.f32.xlu1 %v693_v39 }
 0x62c   :  { %v987_v29 = vpop.f32.mrb[4].mxu1 }
 0x62d   :  { %v550_v63 = vpop.f32.mrb[5].mxu1  ;;  %v582_v31 = vadd.f32 %v987_v29, %v1362_v19 }
 0x62e   :  { %v581_v10 = vadd.f32 %v1362_v19, %v550_v63 }
 0x69b   :  { %v416_v40 = vpop.xlane.xlu0 %415 }
 0x69c   :  { %v420_v28 = vmul.f32 0.03125, %v416_v40 }
 0x69d   :  { %v419_v41 = vpop.xlane.xlu1 %418 }
 0x69e   :  { %v422_v42 = vmul.f32 %v420_v28, %v420_v28  ;;  %v421_v43 = vmul.f32 0.03125, %v419_v41  ;;  %v425_v57 = vsub.f32 %v414_v33, %v420_v28 }
 0x69f   :  { %v692_v44 = vpop.xlane.xlu0 %691 }
 0x6a0   :  { %v423_v45 = vsub.f32 %v421_v43, %v422_v42  ;;  %v696_v13 = vmul.f32 0.03125, %v692_v44 }
 0x6a1   :  { %v695_v47 = vpop.xlane.xlu1 %694 }
 0x6a2   :  { %v424_v49 = vmax.f32 %v423_v45, 0.0  ;;  %v698_v50 = vmul.f32 %v696_v13, %v696_v13  ;;  %v697_v51 = vmul.f32 0.03125, %v695_v47  ;;  %v701_v61 = vsub.f32 %v690_v38, %v696_v13 }
 0x6a4   :  { %v426_v52 = vadd.f32 1e-06, %v424_v49  ;;  %v699_v53 = vsub.f32 %v697_v51, %v698_v50 }
 0x6a6   :  { %1082 = vrsqrt.f32 %v426_v52  ;;  %v700_v54 = vmax.f32 %v699_v53, 0.0 }
 0x6a8   :  { %v702_v55 = vadd.f32 1e-06, %v700_v54 }
 0x6aa   :  { %1084 = vrsqrt.f32 %v702_v55 }
 0x6b0   :  { %v1083_v58 = vpop.eup %1082 }
 0x6b1   :  { %v428_v60 = vmul.f32 %v1083_v58, %v425_v57 }
 0x6b3   :  { %v429_v62 = vmul.f32 %v1331_v46, %v428_v60 }
 0x6b4   :  { %v1085_v0 = vpop.eup %1084 }
 0x6b5   :  { %v430_v2 = vadd.f32 %v1336_v48, %v429_v62  ;;  %v704_v3 = vmul.f32 %v1085_v0, %v701_v61 }
 0x6b7   :  { %v431_v4 = vmax.f32 %v430_v2, 0.0  ;;  %v705_v5 = vmul.f32 %v1377_v56, %v704_v3 }
 0x6b9   :  { %v432_v6 = vmin.f32 %v431_v4, 6.0  ;;  %v706_v7 = vadd.f32 %v1383_v59, %v705_v5 }
 0x6bb   :  { %989 = vmatmul.mubr.f32.gmra.mrb[6].mxu1 %v432_v6  ;;  %439 = vst [vmem:[#allocation11] sm:$0xff] %v432_v6  ;;  %v707_v8 = vmax.f32 %v706_v7, 0.0 }
 0x6bd   :  { %v708_v9 = vmin.f32 %v707_v8, 6.0 }
 0x6bf   :  { %v712_v11 = vmul.f32 %v1367_v20, %v708_v9  ;;  %709 = vst [vmem:[#allocation10 + $0x18] sm:$0xff] %v708_v9 }
 0x6c1   :  { %v713_v46 = vadd.f32 %v712_v11, %v581_v10 }
 0x6c3   :  { %714 = vadd.xlane.f32.xlu0 %v713_v46  ;;  %v716_v12 = vmul.f32 %v713_v46, %v713_v46 }
 0x6c5   :  { %717 = vadd.xlane.f32.xlu1 %v716_v12 }
 0x750   :  { %v715_v48 = vpop.xlane.xlu0 %714 }
 0x751   :  { %v719_v14 = vmul.f32 0.03125, %v715_v48 }
 0x752   :  { %v718_v15 = vpop.xlane.xlu1 %717 }
 0x753   :  { %v721_v16 = vmul.f32 %v719_v14, %v719_v14  ;;  %v720_v17 = vmul.f32 0.03125, %v718_v15  ;;  %v724_v22 = vsub.f32 %v713_v46, %v719_v14 }
 0x755   :  { %v722_v1 = vsub.f32 %v720_v17, %v721_v16 }
 0x757   :  { %v723_v18 = vmax.f32 %v722_v1, 0.0 }
 0x759   :  { %v725_v21 = vadd.f32 1e-06, %v723_v18 }
 0x75b   :  { %1086 = vrsqrt.f32 %v725_v21 }
 0x765   :  { %v1087_v23 = vpop.eup %1086 }
 0x766   :  { %v727_v24 = vmul.f32 %v1087_v23, %v724_v22 }
 0x768   :  { %v728_v25 = vmul.f32 %v1377_v56, %v727_v24 }
 0x76a   :  { %v729_v26 = vadd.f32 %v1383_v59, %v728_v25 }
 0x76c   :  { %v730_v27 = vmax.f32 %v729_v26, 0.0 }
 0x76e   :  { %v731_v30 = vmin.f32 %v730_v27, 6.0 }
 0x770   :  { %v735_v32 = vmul.f32 %v1367_v20, %v731_v30  ;;  %732 = vst [vmem:[#allocation10 + $0x20] sm:$0xff] %v731_v30 }
 0x772   :  { %v736_v33 = vadd.f32 %v735_v32, %v582_v31 }
 0x774   :  { %737 = vadd.xlane.f32.xlu0 %v736_v33  ;;  %v739_v34 = vmul.f32 %v736_v33, %v736_v33 }
 0x776   :  { %740 = vadd.xlane.f32.xlu1 %v739_v34 }
 0x78e   :  { %v990_v35 = vpop.f32.mrb[6].mxu1 }
 0x78f   :  { %v560_v36 = vpop.f32.mrb[7].mxu1  ;;  %v584_v9 = vadd.f32 %v990_v35, %v1362_v19 }
 0x790   :  { %v583_v50 = vadd.f32 %v1362_v19, %v560_v36 }
 0x801   :  { %v738_v37 = vpop.xlane.xlu0 %737 }
 0x802   :  { %v742_v38 = vmul.f32 0.03125, %v738_v37 }
 0x803   :  { %v741_v39 = vpop.xlane.xlu1 %740 }
 0x804   :  { %v744_v63 = vmul.f32 %v742_v38, %v742_v38  ;;  %v743_v40 = vmul.f32 0.03125, %v741_v39  ;;  %v747_v43 = vsub.f32 %v736_v33, %v742_v38 }
 0x806   :  { %v745_v28 = vsub.f32 %v743_v40, %v744_v63 }
 0x808   :  { %v746_v41 = vmax.f32 %v745_v28, 0.0 }
 0x80a   :  { %v748_v42 = vadd.f32 1e-06, %v746_v41 }
 0x80c   :  { %1088 = vrsqrt.f32 %v748_v42 }
 0x816   :  { %v1089_v29 = vpop.eup %1088 }
 0x817   :  { %v750_v44 = vmul.f32 %v1089_v29, %v747_v43 }
 0x819   :  { %v751_v45 = vmul.f32 %v1377_v56, %v750_v44 }
 0x81b   :  { %v752_v13 = vadd.f32 %v1383_v59, %v751_v45 }
 0x81d   :  { %v753_v47 = vmax.f32 %v752_v13, 0.0 }
 0x81f   :  { %v754_v49 = vmin.f32 %v753_v47, 6.0 }
 0x821   :  { %v758_v51 = vmul.f32 %v1367_v20, %v754_v49  ;;  %755 = vst [vmem:[#allocation10 + $0x28] sm:$0xff] %v754_v49 }
 0x823   :  { %v759_v52 = vadd.f32 %v758_v51, %v583_v50 }
 0x825   :  { %760 = vadd.xlane.f32.xlu0 %v759_v52  ;;  %v762_v53 = vmul.f32 %v759_v52, %v759_v52 }
 0x827   :  { %763 = vadd.xlane.f32.xlu1 %v762_v53 }
 0x8b2   :  { %v761_v54 = vpop.xlane.xlu0 %760 }
 0x8b3   :  { %v765_v55 = vmul.f32 0.03125, %v761_v54 }
 0x8b4   :  { %v764_v57 = vpop.xlane.xlu1 %763 }
 0x8b5   :  { %v767_v58 = vmul.f32 %v765_v55, %v765_v55  ;;  %v766_v60 = vmul.f32 0.03125, %v764_v57  ;;  %v770_v2 = vsub.f32 %v759_v52, %v765_v55 }
 0x8b7   :  { %v768_v61 = vsub.f32 %v766_v60, %v767_v58 }
 0x8b9   :  { %v769_v62 = vmax.f32 %v768_v61, 0.0 }
 0x8bb   :  { %v771_v0 = vadd.f32 1e-06, %v769_v62 }
 0x8bd   :  { %1090 = vrsqrt.f32 %v771_v0 }
 0x8c7   :  { %v1091_v3 = vpop.eup %1090 }
 0x8c8   :  { %v773_v4 = vmul.f32 %v1091_v3, %v770_v2 }
 0x8ca   :  { %v774_v5 = vmul.f32 %v1377_v56, %v773_v4 }
 0x8cc   :  { %v775_v6 = vadd.f32 %v1383_v59, %v774_v5 }
 0x8ce   :  { %v776_v7 = vmax.f32 %v775_v6, 0.0 }
 0x8d0   :  { %v777_v8 = vmin.f32 %v776_v7, 6.0 }
 0x8d2   :  { %v781_v10 = vmul.f32 %v1367_v20, %v777_v8  ;;  %778 = vst [vmem:[#allocation10 + $0x30] sm:$0xff] %v777_v8 }
 0x8d4   :  { %v782_v11 = vadd.f32 %v781_v10, %v584_v9 }
 0x8d6   :  { %783 = vadd.xlane.f32.xlu0 %v782_v11  ;;  %v785_v46 = vmul.f32 %v782_v11, %v782_v11 }
 0x8d8   :  { %786 = vadd.xlane.f32.xlu1 %v785_v46 }
 0x963   :  { %v784_v12 = vpop.xlane.xlu0 %783 }
 0x964   :  { %v788_v48 = vmul.f32 0.03125, %v784_v12 }
 0x965   :  { %v787_v14 = vpop.xlane.xlu1 %786 }
 0x966   :  { %v790_v15 = vmul.f32 %v788_v48, %v788_v48  ;;  %v789_v16 = vmul.f32 0.03125, %v787_v14  ;;  %v793_v21 = vsub.f32 %v782_v11, %v788_v48 }
 0x968   :  { %v791_v17 = vsub.f32 %v789_v16, %v790_v15 }
 0x96a   :  { %v792_v1 = vmax.f32 %v791_v17, 0.0 }
 0x96c   :  { %v794_v18 = vadd.f32 1e-06, %v792_v1 }
 0x96e   :  { %1092 = vrsqrt.f32 %v794_v18 }
 0x978   :  { %v1093_v22 = vpop.eup %1092 }
 0x979   :  { %v796_v23 = vmul.f32 %v1093_v22, %v793_v21 }
 0x97b   :  { %v797_v19 = vmul.f32 %v1377_v56, %v796_v23 }
 0x97d   :  { %v798_v20 = vadd.f32 %v1383_v59, %v797_v19 }
 0x97f   :  { %v799_v24 = vmax.f32 %v798_v20, 0.0 }
 0x981   :  { %v800_v25 = vmin.f32 %v799_v24, 6.0 }
 0x983   :  { %801 = vst [vmem:[#allocation10 + $0x38] sm:$0xff] %v800_v25 }
 0x984   :  { %1171 = shalt.err (!%p1168_p0)
}
 0x985   :  { %s1172_s15 = scalar_lea.hbm %s1472_s7, 1024 }
 0x986   :  { %p1173_p1 = scmp.ne.s32.totalorder %s1472_s7, %s1172_s15  ;;  %p1176_p2 = scmp.lt.u32.totalorder %s1172_s15, %s1472_s7 }
 0x988   :  { %p1178_p3 = pnand %p1176_p2, %p1173_p1 }
 0x98a   :  { %1181 = shalt.err (!%p1178_p3)
}
 0x98b   :  { %820 = dma.vmem_to_hbm [thread:$0]  %s815_s6, 1024, %s1472_s7, [#allocation6], %s1214_s17, %s1214_s17, %s1215_s18   ;;  %v806_v56 = vld [vmem:[#allocation10 + $0x38] sm:$0xff] }
 0x98c   :  { %s1218_s21 = smov [#allocation11]   ;;  %808 = vst [vmem:[#allocation11 + $0x8] sm:$0xff] %v806_v56 }
 0x98d   :  { %s826_s22 = sshll.u32 %s1218_s21, 4  ;;  %s827_s22 = int_to_ptr.vmem [resolvable:$true] %s826_s22 }
 0x98e   :  { %s1182_s23 = scalar_lea.vmem %s827_s22, 256  ;;  %p1187_p5 = scmp.lt.s32.totalorder %s827_s22, %s827_s22 }
 0x98f   :  { %p1183_p4 = scmp.ne.s32.totalorder %s827_s22, %s1182_s23  ;;  %p1188_p6 = scmp.lt.s32.totalorder %s1182_s23, %s1182_s23 }
 0x991   :  { %p1189_p7 = por %p1188_p6, %p1187_p5 }
 0x993   :  { %p1190_p8 = pnand %p1189_p7, %p1183_p4 }
 0x995   :  { %1193 = shalt.err (!%p1190_p8)
}
 0x996   :  { %s1194_s26 = scalar_lea.hbm %s1473_s8, 256 }
 0x997   :  { %p1195_p9 = scmp.ne.s32.totalorder %s1473_s8, %s1194_s26  ;;  %p1198_p10 = scmp.lt.u32.totalorder %s1194_s26, %s1473_s8 }
 0x999   :  { %p1200_p11 = pnand %p1198_p10, %p1195_p9 }
 0x99b   :  { %1203 = shalt.err (!%p1200_p11)
}
 0x99c   :  { %832 = dma.vmem_to_hbm [thread:$0]  %s827_s22, 256, %s1473_s8, [#allocation12], %s1214_s17, %s1214_s17, %s1215_s18  }
 0x99d   :  { %1208 = dma.done.wait [#allocation6], 1024  }
 0x99e   :  { %1209 = vsyncadd [#allocation6], 4294966272 }
 0x99f   :  { %1210 = dma.done.wait [#allocation12], 256  }
 0x9a0   :  { %1211 = vsyncadd [#allocation12], 4294967040 }
 0x9a1   :  { %839 = vsyncpa [#allocation5], 1 }
 0x9a2   :  { %840 = vsyncpa [#allocation8], 1 }
 0x9a3   :  { %841 = vsyncpa [#allocation6], 1 }
 0x9a4   :  { %842 = vsyncpa [#allocation12], 1 }

</bundles_post_ra>
